<compile_context>
chip_gen: v5e
topology: v5e:2x2
jax: 0.10.0
libtpu: 0.0.40
codegen_flags: <defaults>
</compile_context>

<pallas_src>
import functools
import math

import jax
import jax.numpy as jnp
from jax import lax
from jax.experimental import pallas as pl
from jax.experimental.pallas import tpu as pltpu


# MXU operand dtype (f32 accumulation everywhere).
_MXU_DTYPE = jnp.bfloat16
_LN_EPS = 1e-5


def _row_tile(m, target=512):
    """Largest row tile <= target that is a multiple of 8 and divides m."""
    if m <= target or m % 8 != 0:
        return m
    t = target - (target % 8)
    while t >= 8:
        if m % t == 0:
            return t
        t -= 8
    return m


def _layernorm_f32(x, g, b, eps):
    mean = jnp.mean(x, axis=-1, keepdims=True)
    var = jnp.mean((x - mean) ** 2, axis=-1, keepdims=True)
    return (x - mean) * lax.rsqrt(var + eps) * g + b


def _gelu_exact(y):
    # exact (erf) GELU, matching torch.nn.GELU default
    return 0.5 * y * (1.0 + lax.erf(y * (1.0 / math.sqrt(2.0))))


# ---------------------------------------------------------------------------
# Pallas kernels
# ---------------------------------------------------------------------------
def _attn_block_kernel(x_ref, g_ref, b_ref, qkvw_ref, qkvb_ref,
                       projw_ref, projb_ref, o_ref,
                       *, num_heads, head_dim, scale, eps):
    """One batch element per grid step: out = x + Wproj @ MHSA(LN1(x))."""
    x = x_ref[0].astype(jnp.float32)                                    # (S, D)
    h = _layernorm_f32(x, g_ref[...], b_ref[...], eps)
    qkv = jnp.dot(h.astype(qkvw_ref.dtype), qkvw_ref[...],
                  preferred_element_type=jnp.float32) + qkvb_ref[...]    # (S, 3D)

    D = num_heads * head_dim
    acc = x + projb_ref[...]                      # residual + proj bias seed
    for hd in range(num_heads):                   # static unroll over heads
        lo = hd * head_dim
        # fold the 1/sqrt(Dh) scale into q (SxDh), not into the (SxS) scores
        q = (qkv[:, lo:lo + head_dim] * scale).astype(_MXU_DTYPE)
        k = qkv[:, D + lo:D + lo + head_dim].astype(_MXU_DTYPE)
        v = qkv[:, 2 * D + lo:2 * D + lo + head_dim].astype(_MXU_DTYPE)
        # contract last dims directly (no in-kernel k.T / XLU transpose)
        s = lax.dot_general(q, k, dimension_numbers=(((1,), (1,)), ((), ())),
                            preferred_element_type=jnp.float32)          # (S, S)
        s = s - jnp.max(s, axis=-1, keepdims=True)
        p = jnp.exp(s)
        p = p * pl.reciprocal(jnp.sum(p, axis=-1, keepdims=True), approx=True)
        o_h = lax.dot_general(p.astype(_MXU_DTYPE), v,
                              dimension_numbers=(((1,), (0,)), ((), ())),
                              preferred_element_type=jnp.float32)         # (S, Dh)
        # accumulate the output projection per head -> no per-head concat
        acc = acc + jnp.dot(o_h.astype(projw_ref.dtype),
                            projw_ref[lo:lo + head_dim, :],
                            preferred_element_type=jnp.float32)
    o_ref[0] = acc.astype(o_ref.dtype)


def pallas_attn_block(x, blk, num_heads, eps=_LN_EPS):
    """x: (Bt, S, D) f32 residual stream -> (Bt, S, D) f32."""
    Bt, S, D = x.shape
    Dh = D // num_heads
    scale = 1.0 / math.sqrt(Dh)
    qkv_w = blk["qkv_w"].astype(_MXU_DTYPE)
    proj_w = blk["attn_proj_w"].astype(_MXU_DTYPE)
    kern = functools.partial(_attn_block_kernel, num_heads=num_heads,
                             head_dim=Dh, scale=scale, eps=eps)
    cost = pl.CostEstimate(
        flops=2 * Bt * S * D * 3 * D               # qkv
              + 4 * Bt * num_heads * S * S * Dh    # attention
              + 2 * Bt * S * D * D                 # out projection
              + 8 * Bt * S * D,                    # LN
        transcendentals=Bt * num_heads * S * S + Bt * S,
        bytes_accessed=(2 * x.dtype.itemsize * Bt * S * D
                        + qkv_w.dtype.itemsize * D * 3 * D
                        + proj_w.dtype.itemsize * D * D),
    )
    return pl.pallas_call(
        kern,
        out_shape=jax.ShapeDtypeStruct((Bt, S, D), x.dtype),
        grid=(Bt,),
        in_specs=[
            pl.BlockSpec((1, S, D), lambda i: (i, 0, 0)),
            pl.BlockSpec((1, D), lambda i: (0, 0)),
            pl.BlockSpec((1, D), lambda i: (0, 0)),
            pl.BlockSpec((D, 3 * D), lambda i: (0, 0)),
            pl.BlockSpec((1, 3 * D), lambda i: (0, 0)),
            pl.BlockSpec((D, D), lambda i: (0, 0)),
            pl.BlockSpec((1, D), lambda i: (0, 0)),
        ],
        out_specs=pl.BlockSpec((1, S, D), lambda i: (i, 0, 0)),
        compiler_params=pltpu.CompilerParams(dimension_semantics=("parallel",)),
        cost_estimate=cost,
    )(x, blk["ln1_g"], blk["ln1_b"], qkv_w, blk["qkv_b"],
      proj_w, blk["attn_proj_b"])


def _mlp_block_kernel(x_ref, g_ref, b_ref, w1_ref, b1_ref, w2_ref, b2_ref,
                      o_ref, *, eps):
    """out = x + fc2(GELU(fc1(LN2(x)))); the 4x hidden stays on-chip."""
    x = x_ref[...].astype(jnp.float32)
    h = _layernorm_f32(x, g_ref[...], b_ref[...], eps)
    u = jnp.dot(h.astype(w1_ref.dtype), w1_ref[...],
                preferred_element_type=jnp.float32) + b1_ref[...]
    u = _gelu_exact(u)
    y = jnp.dot(u.astype(w2_ref.dtype), w2_ref[...],
                preferred_element_type=jnp.float32) + b2_ref[...]
    o_ref[...] = (x + y).astype(o_ref.dtype)


def pallas_mlp_block(x2d, blk, eps=_LN_EPS):
    """x2d: (M, D) f32 residual stream -> (M, D) f32."""
    M, D = x2d.shape
    H = blk["fc1_w"].shape[1]
    TM = _row_tile(M)
    w1 = blk["fc1_w"].astype(_MXU_DTYPE)
    w2 = blk["fc2_w"].astype(_MXU_DTYPE)
    kern = functools.partial(_mlp_block_kernel, eps=eps)
    cost = pl.CostEstimate(
        flops=4 * M * D * H + 8 * M * D + 2 * M * H,
        transcendentals=M * H + M,
        bytes_accessed=(2 * x2d.dtype.itemsize * M * D
                        + w1.dtype.itemsize * D * H
                        + w2.dtype.itemsize * H * D),
    )
    return pl.pallas_call(
        kern,
        out_shape=jax.ShapeDtypeStruct((M, D), x2d.dtype),
        grid=(M // TM,),
        in_specs=[
            pl.BlockSpec((TM, D), lambda i: (i, 0)),
            pl.BlockSpec((1, D), lambda i: (0, 0)),
            pl.BlockSpec((1, D), lambda i: (0, 0)),
            pl.BlockSpec((D, H), lambda i: (0, 0)),
            pl.BlockSpec((1, H), lambda i: (0, 0)),
            pl.BlockSpec((H, D), lambda i: (0, 0)),
            pl.BlockSpec((1, D), lambda i: (0, 0)),
        ],
        out_specs=pl.BlockSpec((TM, D), lambda i: (i, 0)),
        compiler_params=pltpu.CompilerParams(dimension_semantics=("parallel",)),
        cost_estimate=cost,
    )(x2d, blk["ln2_g"], blk["ln2_b"], w1, blk["fc1_b"], w2, blk["fc2_b"])


def _ln_linear_kernel(x_ref, g_ref, b_ref, w_ref, bias_ref, o_ref, *, eps):
    """out = LayerNorm(x) @ W + bias   (final LN + predictor_projector)."""
    x = x_ref[...].astype(jnp.float32)
    h = _layernorm_f32(x, g_ref[...], b_ref[...], eps)
    y = jnp.dot(h.astype(w_ref.dtype), w_ref[...],
                preferred_element_type=jnp.float32) + bias_ref[...]
    o_ref[...] = y.astype(o_ref.dtype)


def pallas_ln_linear(x2d, gamma, beta, w, b, eps=_LN_EPS, out_dtype=jnp.float32):
    """x2d: (M, K); gamma/beta: (1, K); w: (K, N); b: (1, N) -> (M, N)."""
    M, K = x2d.shape
    _, N = w.shape
    TM = _row_tile(M)
    w = w.astype(_MXU_DTYPE)
    kern = functools.partial(_ln_linear_kernel, eps=eps)
    cost = pl.CostEstimate(
        flops=2 * M * K * N + 8 * M * K,
        transcendentals=M,
        bytes_accessed=(x2d.dtype.itemsize * M * K + w.dtype.itemsize * K * N
                        + jnp.dtype(out_dtype).itemsize * M * N),
    )
    return pl.pallas_call(
        kern,
        out_shape=jax.ShapeDtypeStruct((M, N), out_dtype),
        grid=(M // TM,),
        in_specs=[
            pl.BlockSpec((TM, K), lambda i: (i, 0)),
            pl.BlockSpec((1, K), lambda i: (0, 0)),
            pl.BlockSpec((1, K), lambda i: (0, 0)),
            pl.BlockSpec((K, N), lambda i: (0, 0)),
            pl.BlockSpec((1, N), lambda i: (0, 0)),
        ],
        out_specs=pl.BlockSpec((TM, N), lambda i: (i, 0)),
        compiler_params=pltpu.CompilerParams(dimension_semantics=("parallel",)),
        cost_estimate=cost,
    )(x2d, gamma, beta, w, b)


def _linear_residual_kernel(x_ref, w_ref, bias_ref, r_ref, o_ref):
    """out = residual + x @ W + bias   (predictor_embed + pos-embed add)."""
    y = jnp.dot(x_ref[...].astype(w_ref.dtype), w_ref[...],
                preferred_element_type=jnp.float32) + bias_ref[...]
    o_ref[...] = (y + r_ref[...].astype(jnp.float32)).astype(o_ref.dtype)


def pallas_linear_residual(x2d, w, b, residual, out_dtype=jnp.float32):
    """x2d: (M, K); w: (K, N); b: (1, N); residual: (M, N) -> (M, N)."""
    M, K = x2d.shape
    _, N = w.shape
    TM = _row_tile(M)
    w = w.astype(_MXU_DTYPE)
    cost = pl.CostEstimate(
        flops=2 * M * K * N + M * N,
        transcendentals=0,
        bytes_accessed=(x2d.dtype.itemsize * M * K + w.dtype.itemsize * K * N
                        + residual.dtype.itemsize * M * N
                        + jnp.dtype(out_dtype).itemsize * M * N),
    )
    return pl.pallas_call(
        _linear_residual_kernel,
        out_shape=jax.ShapeDtypeStruct((M, N), out_dtype),
        grid=(M // TM,),
        in_specs=[
            pl.BlockSpec((TM, K), lambda i: (i, 0)),
            pl.BlockSpec((K, N), lambda i: (0, 0)),
            pl.BlockSpec((1, N), lambda i: (0, 0)),
            pl.BlockSpec((TM, N), lambda i: (i, 0)),
        ],
        out_specs=pl.BlockSpec((TM, N), lambda i: (i, 0)),
        compiler_params=pltpu.CompilerParams(dimension_semantics=("parallel",)),
        cost_estimate=cost,
    )(x2d, w, b, residual)


# ---------------------------------------------------------------------------
# Plain-JAX glue (positional encoding, mask gather, parameter init)
# ---------------------------------------------------------------------------
def positional_encoding(token_length, d, n=10000.0):
    pos = jnp.arange(token_length, dtype=jnp.float32)[:, None]
    i = jnp.arange(d // 2, dtype=jnp.float32)[None, :]
    denom = jnp.power(n, 2.0 * i / d)
    pe = jnp.zeros((token_length, d), jnp.float32)
    pe = pe.at[:, 0::2].set(jnp.sin(pos / denom))
    pe = pe.at[:, 1::2].set(jnp.cos(pos / denom))
    return pe


def apply_masks_over_embedded_patches(x, masks):
    """x: (B, P, D); masks: list of (B, K) int index arrays. Gather along dim 1,
    concatenate results along dim 0 (standard I-JEPA apply_masks)."""
    outs = []
    B, _, D = x.shape
    for m in masks:
        idx = jnp.broadcast_to(m[:, :, None], (B, m.shape[1], D))
        outs.append(jnp.take_along_axis(x, idx, axis=1))
    return jnp.concatenate(outs, axis=0)


def precompute_positional_embeddings(num_patches, pred_dim, batch_size,
                                     masks_ctxt, masks_pred_target):
    """Depends only on static shapes + masks; computed once outside the forward."""
    pos = positional_encoding(num_patches, pred_dim)
    pos_b = jnp.broadcast_to(pos[None], (batch_size, num_patches, pred_dim))
    pos_ctxt = apply_masks_over_embedded_patches(pos_b, masks_ctxt)
    pos_pred = apply_masks_over_embedded_patches(pos_b, masks_pred_target)
    return pos_ctxt, pos_pred


def trunc_normal(key, shape, std=0.02):
    return std * jax.random.truncated_normal(key, -2.0, 2.0, shape, jnp.float32)


def init_params(key, input_dim, pred_dim, depth, mlp_ratio=4):
    keys = jax.random.split(key, 4 + depth)
    p = {
        "embed_w": trunc_normal(keys[0], (input_dim, pred_dim)),
        "embed_b": jnp.zeros((1, pred_dim), jnp.float32),
        # mask_token stays zeros: _init_weights_ only touches Linear/LayerNorm/Conv2d.
        "mask_token": jnp.zeros((1, 1, pred_dim), jnp.float32),
        "final_ln_g": jnp.ones((1, pred_dim), jnp.float32),
        "final_ln_b": jnp.zeros((1, pred_dim), jnp.float32),
        "proj_w": trunc_normal(keys[1], (pred_dim, input_dim)),
        "proj_b": jnp.zeros((1, input_dim), jnp.float32),
        "blocks": [],
    }
    hidden = mlp_ratio * pred_dim
    for layer in range(depth):
        lk = jax.random.split(keys[4 + layer], 4)
        p["blocks"].append({
            "ln1_g": jnp.ones((1, pred_dim), jnp.float32),
            "ln1_b": jnp.zeros((1, pred_dim), jnp.float32),
            "qkv_w": trunc_normal(lk[0], (pred_dim, 3 * pred_dim)),
            "qkv_b": jnp.zeros((1, 3 * pred_dim), jnp.float32),
            "attn_proj_w": trunc_normal(lk[1], (pred_dim, pred_dim)),
            "attn_proj_b": jnp.zeros((1, pred_dim), jnp.float32),
            "ln2_g": jnp.ones((1, pred_dim), jnp.float32),
            "ln2_b": jnp.zeros((1, pred_dim), jnp.float32),
            "fc1_w": trunc_normal(lk[2], (pred_dim, hidden)),
            "fc1_b": jnp.zeros((1, hidden), jnp.float32),
            "fc2_w": trunc_normal(lk[3], (hidden, pred_dim)),
            "fc2_b": jnp.zeros((1, pred_dim), jnp.float32),
        })
    return p


# ---------------------------------------------------------------------------
# Model forward
# ---------------------------------------------------------------------------
def transformer_block(x, blk, num_heads):
    """Pre-norm ViT block, two fused kernels:
         x = x + proj(attn(LN1(x)))   (pallas_attn_block)
         x = x + fc2(gelu(fc1(LN2(x))))   (pallas_mlp_block)."""
    Bt, S, D = x.shape
    x = pallas_attn_block(x, blk, num_heads)
    x2 = pallas_mlp_block(x.reshape(Bt * S, D), blk)
    return x2.reshape(Bt, S, D)


def vit_predictor_forward(params, x, masks_ctxt, masks_pred_target,
                          pos_ctxt, pos_pred, *, num_heads):
    B_in, num_ctxt, input_dim = x.shape
    pred_dim = params["embed_w"].shape[1]

    # predictor_embed with the context positional-embedding add fused in
    x = pallas_linear_residual(
        x.reshape(-1, input_dim), params["embed_w"], params["embed_b"],
        pos_ctxt.reshape(-1, pred_dim)).reshape(B_in, num_ctxt, pred_dim)

    # mask tokens + their positional embedding
    pred_tokens = params["mask_token"] + pos_pred                      # (B*Np, num_pred, D)

    x = jnp.tile(x, (len(masks_pred_target), 1, 1))                    # (B*Np, num_ctxt, D)
    x = jnp.concatenate([x, pred_tokens], axis=1)                      # (B*Np, S, D)

    for blk in params["blocks"]:
        x = transformer_block(x, blk, num_heads)

    # final LayerNorm + predictor_projector fused.  LayerNorm is per-token, so
    # dropping the context tokens before the kernel is exactly equivalent to
    # LN-then-slice in the reference and skips work on discarded tokens.
    xp = x[:, num_ctxt:]                                               # (B*Np, num_pred, D)
    Bt, Sp, D = xp.shape
    out = pallas_ln_linear(xp.reshape(-1, D),
                           params["final_ln_g"], params["final_ln_b"],
                           params["proj_w"], params["proj_b"])
    return out.reshape(Bt, Sp, input_dim)


# ---------------------------------------------------------------------------
# Main
# ---------------------------------------------------------------------------
if __name__ == "__main__":
    # small, forward-consistent shapes
    B = 2                 # logical batch
    num_patches = 16
    input_dim = 48        # encoder embedding dim (predictor input/output dim)
    pred_dim = 32         # predictor_network_embedding_dim
    num_heads = 2
    depth = 2
    num_ctxt = 8          # context patches per image
    num_pred = 4          # predicted-target patches per mask

    key = jax.random.PRNGKey(0)
    kx, kp = jax.random.split(key)

    # one context mask, two prediction masks (deterministic indices)
    masks_ctxt = [jnp.tile(jnp.arange(0, num_ctxt, dtype=jnp.int32)[None, :], (B, 1))]
    masks_pred_target = [
        jnp.tile(jnp.arange(8, 12, dtype=jnp.int32)[None, :], (B, 1)),
        jnp.tile(jnp.arange(12, 16, dtype=jnp.int32)[None, :], (B, 1)),
    ]

    # x is the context-masked encoder output: (B * len(masks_ctxt), num_ctxt, input_dim)
    x = jax.random.normal(kx, (B * len(masks_ctxt), num_ctxt, input_dim), jnp.float32)

    params = init_params(kp, input_dim, pred_dim, depth)

    # positional embeddings depend only on static shapes + masks: compute once
    pos_ctxt, pos_pred = precompute_positional_embeddings(
        num_patches, pred_dim, B, masks_ctxt, masks_pred_target)

    fwd = jax.jit(functools.partial(vit_predictor_forward, num_heads=num_heads))
    out = fwd(params, x, masks_ctxt, masks_pred_target, pos_ctxt, pos_pred)
    out = jax.block_until_ready(out)

    assert out.shape == (B * len(masks_pred_target), num_pred, input_dim), out.shape
    assert bool(jnp.all(jnp.isfinite(out)))
    print("KERNEL_OK")
</pallas_src>

<mosaic_0001>
module attributes {stable_mosaic.version = 11 : i64} {
  func.func @_linear_residual_kernel(%arg0: i32, %arg1: memref<16x48xf32, #tpu.memory_space<vmem>>, %arg2: memref<48x32xbf16, #tpu.memory_space<vmem>>, %arg3: memref<1x32xf32, #tpu.memory_space<vmem>>, %arg4: memref<16x32xf32, #tpu.memory_space<vmem>>, %arg5: memref<16x32xf32, #tpu.memory_space<vmem>>) attributes {dimension_semantics = [#tpu.dimension_semantics<parallel>], iteration_bounds = array<i64: 1>, scalar_prefetch = 0 : i64, scratch_operands = 0 : i64, tpu.core_type = #tpu.core_type<tc>, window_params = [{transform_indices = @transform_0, window_bounds = array<i64: 16, 48>}, {pipeline_mode = #tpu.pipeline_mode<synchronous>, transform_indices = @transform_1, window_bounds = array<i64: 48, 32>}, {pipeline_mode = #tpu.pipeline_mode<synchronous>, transform_indices = @transform_2, window_bounds = array<i64: 1, 32>}, {transform_indices = @transform_3, window_bounds = array<i64: 16, 32>}, {transform_indices = @transform_4, window_bounds = array<i64: 16, 32>}]} {
    %c0 = arith.constant 0 : index
    %c0_0 = arith.constant 0 : index
    %0 = vector.load %arg1[%c0, %c0_0] : memref<16x48xf32, #tpu.memory_space<vmem>>, vector<16x48xf32>
    %1 = arith.truncf %0 : vector<16x48xf32> to vector<16x48xbf16>
    %c0_1 = arith.constant 0 : index
    %c0_2 = arith.constant 0 : index
    %2 = vector.load %arg2[%c0_1, %c0_2] : memref<48x32xbf16, #tpu.memory_space<vmem>>, vector<48x32xbf16>
    %cst = arith.constant dense<0.000000e+00> : vector<16x32xf32>
    %3 = tpu.matmul %1, %2, %cst {dimension_numbers = #tpu.dot_dimension_numbers<[1], [0], [0], [1], [0, 0, 1, 1], [], []>} : vector<16x48xbf16>, vector<48x32xbf16>, vector<16x32xf32> -> vector<16x32xf32>
    %c0_3 = arith.constant 0 : index
    %c0_4 = arith.constant 0 : index
    %4 = vector.load %arg3[%c0_3, %c0_4] : memref<1x32xf32, #tpu.memory_space<vmem>>, vector<1x32xf32>
    %5 = vector.broadcast %4 : vector<1x32xf32> to vector<16x32xf32>
    %6 = arith.addf %3, %5 : vector<16x32xf32>
    %c0_5 = arith.constant 0 : index
    %c0_6 = arith.constant 0 : index
    %7 = vector.load %arg4[%c0_5, %c0_6] : memref<16x32xf32, #tpu.memory_space<vmem>>, vector<16x32xf32>
    %8 = arith.addf %6, %7 : vector<16x32xf32>
    %c0_7 = arith.constant 0 : index
    %c0_8 = arith.constant 0 : index
    %9 = vector.load %arg5[%c0_7, %c0_8] : memref<16x32xf32, #tpu.memory_space<vmem>>, vector<16x32xf32>
    tpu.vector_store %arg5[%c0_7, %c0_8], %8 {strides = array<i32>} : memref<16x32xf32, #tpu.memory_space<vmem>>, vector<16x32xf32>,
    return
  }
  func.func @transform_0(%arg0: i32) -> (i32, i32) {
    %c0_i32 = arith.constant 0 : i32
    %c0_i32_0 = arith.constant 0 : i32
    return %arg0, %c0_i32 : i32, i32
  }
  func.func @transform_1(%arg0: i32) -> (i32, i32) {
    %c0_i32 = arith.constant 0 : i32
    %c0_i32_0 = arith.constant 0 : i32
    %c0_i32_1 = arith.constant 0 : i32
    return %c0_i32, %c0_i32_0 : i32, i32
  }
  func.func @transform_2(%arg0: i32) -> (i32, i32) {
    %c0_i32 = arith.constant 0 : i32
    %c0_i32_0 = arith.constant 0 : i32
    %c0_i32_1 = arith.constant 0 : i32
    return %c0_i32, %c0_i32_0 : i32, i32
  }
  func.func @transform_3(%arg0: i32) -> (i32, i32) {
    %c0_i32 = arith.constant 0 : i32
    %c0_i32_0 = arith.constant 0 : i32
    return %arg0, %c0_i32 : i32, i32
  }
  func.func @transform_4(%arg0: i32) -> (i32, i32) {
    %c0_i32 = arith.constant 0 : i32
    %c0_i32_0 = arith.constant 0 : i32
    return %arg0, %c0_i32 : i32, i32
  }
}

module attributes {stable_mosaic.version = 11 : i64} {
  func.func @_mlp_block_kernel(%arg0: i32, %arg1: memref<48x32xf32, #tpu.memory_space<vmem>>, %arg2: memref<1x32xf32, #tpu.memory_space<vmem>>, %arg3: memref<1x32xf32, #tpu.memory_space<vmem>>, %arg4: memref<32x128xbf16, #tpu.memory_space<vmem>>, %arg5: memref<1x128xf32, #tpu.memory_space<vmem>>, %arg6: memref<128x32xbf16, #tpu.memory_space<vmem>>, %arg7: memref<1x32xf32, #tpu.memory_space<vmem>>, %arg8: memref<48x32xf32, #tpu.memory_space<vmem>>) attributes {dimension_semantics = [#tpu.dimension_semantics<parallel>], iteration_bounds = array<i64: 1>, scalar_prefetch = 0 : i64, scratch_operands = 0 : i64, tpu.core_type = #tpu.core_type<tc>, window_params = [{transform_indices = @transform_0, window_bounds = array<i64: 48, 32>}, {pipeline_mode = #tpu.pipeline_mode<synchronous>, transform_indices = @transform_1, window_bounds = array<i64: 1, 32>}, {pipeline_mode = #tpu.pipeline_mode<synchronous>, transform_indices = @transform_2, window_bounds = array<i64: 1, 32>}, {pipeline_mode = #tpu.pipeline_mode<synchronous>, transform_indices = @transform_3, window_bounds = array<i64: 32, 128>}, {pipeline_mode = #tpu.pipeline_mode<synchronous>, transform_indices = @transform_4, window_bounds = array<i64: 1, 128>}, {pipeline_mode = #tpu.pipeline_mode<synchronous>, transform_indices = @transform_5, window_bounds = array<i64: 128, 32>}, {pipeline_mode = #tpu.pipeline_mode<synchronous>, transform_indices = @transform_6, window_bounds = array<i64: 1, 32>}, {transform_indices = @transform_7, window_bounds = array<i64: 48, 32>}]} {
    %c0 = arith.constant 0 : index
    %c0_0 = arith.constant 0 : index
    %0 = vector.load %arg1[%c0, %c0_0] : memref<48x32xf32, #tpu.memory_space<vmem>>, vector<48x32xf32>
    %c0_1 = arith.constant 0 : index
    %c0_2 = arith.constant 0 : index
    %1 = vector.load %arg2[%c0_1, %c0_2] : memref<1x32xf32, #tpu.memory_space<vmem>>, vector<1x32xf32>
    %c0_3 = arith.constant 0 : index
    %c0_4 = arith.constant 0 : index
    %2 = vector.load %arg3[%c0_3, %c0_4] : memref<1x32xf32, #tpu.memory_space<vmem>>, vector<1x32xf32>
    %cst = arith.constant dense<0.000000e+00> : vector<48xf32>
    %3 = vector.multi_reduction <add>, %0, %cst [1] : vector<48x32xf32> to vector<48xf32>
    %4 = vector.shape_cast %3 : vector<48xf32> to vector<48x1xf32>
    %cst_5 = arith.constant 3.200000e+01 : f32
    %5 = vector.broadcast %cst_5 : f32 to vector<48x1xf32>
    %6 = arith.divf %4, %5 : vector<48x1xf32>
    %7 = vector.broadcast %6 : vector<48x1xf32> to vector<48x32xf32>
    %8 = arith.subf %0, %7 : vector<48x32xf32>
    %9 = arith.mulf %8, %8 : vector<48x32xf32>
    %cst_6 = arith.constant dense<0.000000e+00> : vector<48xf32>
    %10 = vector.multi_reduction <add>, %9, %cst_6 [1] : vector<48x32xf32> to vector<48xf32>
    %11 = vector.shape_cast %10 : vector<48xf32> to vector<48x1xf32>
    %cst_7 = arith.constant 3.200000e+01 : f32
    %12 = vector.broadcast %cst_7 : f32 to vector<48x1xf32>
    %13 = arith.divf %11, %12 : vector<48x1xf32>
    %14 = vector.broadcast %6 : vector<48x1xf32> to vector<48x32xf32>
    %15 = arith.subf %0, %14 : vector<48x32xf32>
    %cst_8 = arith.constant 9.99999974E-6 : f32
    %16 = vector.broadcast %cst_8 : f32 to vector<48x1xf32>
    %17 = arith.addf %13, %16 : vector<48x1xf32>
    %18 = math.rsqrt %17 : vector<48x1xf32>
    %19 = vector.broadcast %18 : vector<48x1xf32> to vector<48x32xf32>
    %20 = arith.mulf %15, %19 : vector<48x32xf32>
    %21 = vector.broadcast %1 : vector<1x32xf32> to vector<48x32xf32>
    %22 = arith.mulf %20, %21 : vector<48x32xf32>
    %23 = vector.broadcast %2 : vector<1x32xf32> to vector<48x32xf32>
    %24 = arith.addf %22, %23 : vector<48x32xf32>
    %25 = arith.truncf %24 : vector<48x32xf32> to vector<48x32xbf16>
    %c0_9 = arith.constant 0 : index
    %c0_10 = arith.constant 0 : index
    %26 = vector.load %arg4[%c0_9, %c0_10] : memref<32x128xbf16, #tpu.memory_space<vmem>>, vector<32x128xbf16>
    %cst_11 = arith.constant dense<0.000000e+00> : vector<48x128xf32>
    %27 = tpu.matmul %25, %26, %cst_11 {dimension_numbers = #tpu.dot_dimension_numbers<[1], [0], [0], [1], [0, 0, 1, 1], [], []>} : vector<48x32xbf16>, vector<32x128xbf16>, vector<48x128xf32> -> vector<48x128xf32>
    %c0_12 = arith.constant 0 : index
    %c0_13 = arith.constant 0 : index
    %28 = vector.load %arg5[%c0_12, %c0_13] : memref<1x128xf32, #tpu.memory_space<vmem>>, vector<1x128xf32>
    %29 = vector.broadcast %28 : vector<1x128xf32> to vector<48x128xf32>
    %30 = arith.addf %27, %29 : vector<48x128xf32>
    %cst_14 = arith.constant 5.000000e-01 : f32
    %31 = vector.broadcast %cst_14 : f32 to vector<48x128xf32>
    %32 = arith.mulf %31, %30 : vector<48x128xf32>
    %cst_15 = arith.constant 0.707106769 : f32
    %33 = vector.broadcast %cst_15 : f32 to vector<48x128xf32>
    %34 = arith.mulf %30, %33 : vector<48x128xf32>
    %35 = math.erf %34 : vector<48x128xf32>
    %cst_16 = arith.constant 1.000000e+00 : f32
    %36 = vector.broadcast %cst_16 : f32 to vector<48x128xf32>
    %37 = arith.addf %36, %35 : vector<48x128xf32>
    %38 = arith.mulf %32, %37 : vector<48x128xf32>
    %39 = arith.truncf %38 : vector<48x128xf32> to vector<48x128xbf16>
    %c0_17 = arith.constant 0 : index
    %c0_18 = arith.constant 0 : index
    %40 = vector.load %arg6[%c0_17, %c0_18] : memref<128x32xbf16, #tpu.memory_space<vmem>>, vector<128x32xbf16>
    %cst_19 = arith.constant dense<0.000000e+00> : vector<48x32xf32>
    %41 = tpu.matmul %39, %40, %cst_19 {dimension_numbers = #tpu.dot_dimension_numbers<[1], [0], [0], [1], [0, 0, 1, 1], [], []>} : vector<48x128xbf16>, vector<128x32xbf16>, vector<48x32xf32> -> vector<48x32xf32>
    %c0_20 = arith.constant 0 : index
    %c0_21 = arith.constant 0 : index
    %42 = vector.load %arg7[%c0_20, %c0_21] : memref<1x32xf32, #tpu.memory_space<vmem>>, vector<1x32xf32>
    %43 = vector.broadcast %42 : vector<1x32xf32> to vector<48x32xf32>
    %44 = arith.addf %41, %43 : vector<48x32xf32>
    %45 = arith.addf %0, %44 : vector<48x32xf32>
    %c0_22 = arith.constant 0 : index
    %c0_23 = arith.constant 0 : index
    %46 = vector.load %arg8[%c0_22, %c0_23] : memref<48x32xf32, #tpu.memory_space<vmem>>, vector<48x32xf32>
    tpu.vector_store %arg8[%c0_22, %c0_23], %45 {strides = array<i32>} : memref<48x32xf32, #tpu.memory_space<vmem>>, vector<48x32xf32>,
    return
  }
  func.func @transform_0(%arg0: i32) -> (i32, i32) {
    %c0_i32 = arith.constant 0 : i32
    %c0_i32_0 = arith.constant 0 : i32
    return %arg0, %c0_i32 : i32, i32
  }
  func.func @transform_1(%arg0: i32) -> (i32, i32) {
    %c0_i32 = arith.constant 0 : i32
    %c0_i32_0 = arith.constant 0 : i32
    %c0_i32_1 = arith.constant 0 : i32
    return %c0_i32, %c0_i32_0 : i32, i32
  }
  func.func @transform_2(%arg0: i32) -> (i32, i32) {
    %c0_i32 = arith.constant 0 : i32
    %c0_i32_0 = arith.constant 0 : i32
    %c0_i32_1 = arith.constant 0 : i32
    return %c0_i32, %c0_i32_0 : i32, i32
  }
  func.func @transform_3(%arg0: i32) -> (i32, i32) {
    %c0_i32 = arith.constant 0 : i32
    %c0_i32_0 = arith.constant 0 : i32
    %c0_i32_1 = arith.constant 0 : i32
    return %c0_i32, %c0_i32_0 : i32, i32
  }
  func.func @transform_4(%arg0: i32) -> (i32, i32) {
    %c0_i32 = arith.constant 0 : i32
    %c0_i32_0 = arith.constant 0 : i32
    %c0_i32_1 = arith.constant 0 : i32
    return %c0_i32, %c0_i32_0 : i32, i32
  }
  func.func @transform_5(%arg0: i32) -> (i32, i32) {
    %c0_i32 = arith.constant 0 : i32
    %c0_i32_0 = arith.constant 0 : i32
    %c0_i32_1 = arith.constant 0 : i32
    return %c0_i32, %c0_i32_0 : i32, i32
  }
  func.func @transform_6(%arg0: i32) -> (i32, i32) {
    %c0_i32 = arith.constant 0 : i32
    %c0_i32_0 = arith.constant 0 : i32
    %c0_i32_1 = arith.constant 0 : i32
    return %c0_i32, %c0_i32_0 : i32, i32
  }
  func.func @transform_7(%arg0: i32) -> (i32, i32) {
    %c0_i32 = arith.constant 0 : i32
    %c0_i32_0 = arith.constant 0 : i32
    return %arg0, %c0_i32 : i32, i32
  }
}

module attributes {stable_mosaic.version = 11 : i64} {
  func.func @_attn_block_kernel(%arg0: i32, %arg1: memref<1x12x32xf32, #tpu.memory_space<vmem>>, %arg2: memref<1x32xf32, #tpu.memory_space<vmem>>, %arg3: memref<1x32xf32, #tpu.memory_space<vmem>>, %arg4: memref<32x96xbf16, #tpu.memory_space<vmem>>, %arg5: memref<1x96xf32, #tpu.memory_space<vmem>>, %arg6: memref<32x32xbf16, #tpu.memory_space<vmem>>, %arg7: memref<1x32xf32, #tpu.memory_space<vmem>>, %arg8: memref<1x12x32xf32, #tpu.memory_space<vmem>>) attributes {dimension_semantics = [#tpu.dimension_semantics<parallel>], iteration_bounds = array<i64: 4>, scalar_prefetch = 0 : i64, scratch_operands = 0 : i64, tpu.core_type = #tpu.core_type<tc>, window_params = [{transform_indices = @transform_0, window_bounds = array<i64: 1, 12, 32>}, {pipeline_mode = #tpu.pipeline_mode<synchronous>, transform_indices = @transform_1, window_bounds = array<i64: 1, 32>}, {pipeline_mode = #tpu.pipeline_mode<synchronous>, transform_indices = @transform_2, window_bounds = array<i64: 1, 32>}, {pipeline_mode = #tpu.pipeline_mode<synchronous>, transform_indices = @transform_3, window_bounds = array<i64: 32, 96>}, {pipeline_mode = #tpu.pipeline_mode<synchronous>, transform_indices = @transform_4, window_bounds = array<i64: 1, 96>}, {pipeline_mode = #tpu.pipeline_mode<synchronous>, transform_indices = @transform_5, window_bounds = array<i64: 32, 32>}, {pipeline_mode = #tpu.pipeline_mode<synchronous>, transform_indices = @transform_6, window_bounds = array<i64: 1, 32>}, {transform_indices = @transform_7, window_bounds = array<i64: 1, 12, 32>}]} {
    %c0 = arith.constant 0 : index
    %c0_0 = arith.constant 0 : index
    %c0_1 = arith.constant 0 : index
    %0 = vector.load %arg1[%c0, %c0_0, %c0_1] : memref<1x12x32xf32, #tpu.memory_space<vmem>>, vector<1x12x32xf32>
    %1 = vector.shape_cast %0 : vector<1x12x32xf32> to vector<12x32xf32>
    %c0_2 = arith.constant 0 : index
    %c0_3 = arith.constant 0 : index
    %2 = vector.load %arg2[%c0_2, %c0_3] : memref<1x32xf32, #tpu.memory_space<vmem>>, vector<1x32xf32>
    %c0_4 = arith.constant 0 : index
    %c0_5 = arith.constant 0 : index
    %3 = vector.load %arg3[%c0_4, %c0_5] : memref<1x32xf32, #tpu.memory_space<vmem>>, vector<1x32xf32>
    %cst = arith.constant dense<0.000000e+00> : vector<12xf32>
    %4 = vector.multi_reduction <add>, %1, %cst [1] : vector<12x32xf32> to vector<12xf32>
    %5 = vector.shape_cast %4 : vector<12xf32> to vector<12x1xf32>
    %cst_6 = arith.constant 3.200000e+01 : f32
    %6 = vector.broadcast %cst_6 : f32 to vector<12x1xf32>
    %7 = arith.divf %5, %6 : vector<12x1xf32>
    %8 = vector.broadcast %7 : vector<12x1xf32> to vector<12x32xf32>
    %9 = arith.subf %1, %8 : vector<12x32xf32>
    %10 = arith.mulf %9, %9 : vector<12x32xf32>
    %cst_7 = arith.constant dense<0.000000e+00> : vector<12xf32>
    %11 = vector.multi_reduction <add>, %10, %cst_7 [1] : vector<12x32xf32> to vector<12xf32>
    %12 = vector.shape_cast %11 : vector<12xf32> to vector<12x1xf32>
    %cst_8 = arith.constant 3.200000e+01 : f32
    %13 = vector.broadcast %cst_8 : f32 to vector<12x1xf32>
    %14 = arith.divf %12, %13 : vector<12x1xf32>
    %15 = vector.broadcast %7 : vector<12x1xf32> to vector<12x32xf32>
    %16 = arith.subf %1, %15 : vector<12x32xf32>
    %cst_9 = arith.constant 9.99999974E-6 : f32
    %17 = vector.broadcast %cst_9 : f32 to vector<12x1xf32>
    %18 = arith.addf %14, %17 : vector<12x1xf32>
    %19 = math.rsqrt %18 : vector<12x1xf32>
    %20 = vector.broadcast %19 : vector<12x1xf32> to vector<12x32xf32>
    %21 = arith.mulf %16, %20 : vector<12x32xf32>
    %22 = vector.broadcast %2 : vector<1x32xf32> to vector<12x32xf32>
    %23 = arith.mulf %21, %22 : vector<12x32xf32>
    %24 = vector.broadcast %3 : vector<1x32xf32> to vector<12x32xf32>
    %25 = arith.addf %23, %24 : vector<12x32xf32>
    %26 = arith.truncf %25 : vector<12x32xf32> to vector<12x32xbf16>
    %c0_10 = arith.constant 0 : index
    %c0_11 = arith.constant 0 : index
    %27 = vector.load %arg4[%c0_10, %c0_11] : memref<32x96xbf16, #tpu.memory_space<vmem>>, vector<32x96xbf16>
    %cst_12 = arith.constant dense<0.000000e+00> : vector<12x96xf32>
    %28 = tpu.matmul %26, %27, %cst_12 {dimension_numbers = #tpu.dot_dimension_numbers<[1], [0], [0], [1], [0, 0, 1, 1], [], []>} : vector<12x32xbf16>, vector<32x96xbf16>, vector<12x96xf32> -> vector<12x96xf32>
    %c0_13 = arith.constant 0 : index
    %c0_14 = arith.constant 0 : index
    %29 = vector.load %arg5[%c0_13, %c0_14] : memref<1x96xf32, #tpu.memory_space<vmem>>, vector<1x96xf32>
    %30 = vector.broadcast %29 : vector<1x96xf32> to vector<12x96xf32>
    %31 = arith.addf %28, %30 : vector<12x96xf32>
    %c0_15 = arith.constant 0 : index
    %c0_16 = arith.constant 0 : index
    %32 = vector.load %arg7[%c0_15, %c0_16] : memref<1x32xf32, #tpu.memory_space<vmem>>, vector<1x32xf32>
    %33 = vector.broadcast %32 : vector<1x32xf32> to vector<12x32xf32>
    %34 = arith.addf %1, %33 : vector<12x32xf32>
    %35 = vector.extract_strided_slice %31 {offsets = [0, 0], sizes = [12, 16], strides = [1, 1]} : vector<12x96xf32> to vector<12x16xf32>
    %cst_17 = arith.constant 2.500000e-01 : f32
    %36 = vector.broadcast %cst_17 : f32 to vector<12x16xf32>
    %37 = arith.mulf %35, %36 : vector<12x16xf32>
    %38 = arith.truncf %37 : vector<12x16xf32> to vector<12x16xbf16>
    %39 = vector.extract_strided_slice %31 {offsets = [0, 32], sizes = [12, 16], strides = [1, 1]} : vector<12x96xf32> to vector<12x16xf32>
    %40 = arith.truncf %39 : vector<12x16xf32> to vector<12x16xbf16>
    %41 = vector.extract_strided_slice %31 {offsets = [0, 64], sizes = [12, 16], strides = [1, 1]} : vector<12x96xf32> to vector<12x16xf32>
    %42 = arith.truncf %41 : vector<12x16xf32> to vector<12x16xbf16>
    %cst_18 = arith.constant dense<0.000000e+00> : vector<12x12xf32>
    %43 = tpu.matmul %38, %40, %cst_18 {dimension_numbers = #tpu.dot_dimension_numbers<[1], [1], [0], [0], [0, 0, 1, 0], [], []>} : vector<12x16xbf16>, vector<12x16xbf16>, vector<12x12xf32> -> vector<12x12xf32>
    %cst_19 = arith.constant dense<0xFF800000> : vector<12xf32>
    %44 = vector.multi_reduction <maximumf>, %43, %cst_19 [1] : vector<12x12xf32> to vector<12xf32>
    %45 = vector.shape_cast %44 : vector<12xf32> to vector<12x1xf32>
    %46 = vector.broadcast %45 : vector<12x1xf32> to vector<12x12xf32>
    %47 = arith.subf %43, %46 : vector<12x12xf32>
    %48 = math.exp %47 : vector<12x12xf32>
    %cst_20 = arith.constant dense<0.000000e+00> : vector<12xf32>
    %49 = vector.multi_reduction <add>, %48, %cst_20 [1] : vector<12x12xf32> to vector<12xf32>
    %50 = vector.shape_cast %49 : vector<12xf32> to vector<12x1xf32>
    %51 = tpu.reciprocal %50 {approx = true} : vector<12x1xf32> -> vector<12x1xf32>
    %52 = vector.broadcast %51 : vector<12x1xf32> to vector<12x12xf32>
    %53 = arith.mulf %48, %52 : vector<12x12xf32>
    %54 = arith.truncf %53 : vector<12x12xf32> to vector<12x12xbf16>
    %cst_21 = arith.constant dense<0.000000e+00> : vector<12x16xf32>
    %55 = tpu.matmul %54, %42, %cst_21 {dimension_numbers = #tpu.dot_dimension_numbers<[1], [0], [0], [1], [0, 0, 1, 1], [], []>} : vector<12x12xbf16>, vector<12x16xbf16>, vector<12x16xf32> -> vector<12x16xf32>
    %56 = arith.truncf %55 : vector<12x16xf32> to vector<12x16xbf16>
    %c0_22 = arith.constant 0 : index
    %c0_23 = arith.constant 0 : index
    %57 = vector.load %arg6[%c0_22, %c0_23] : memref<32x32xbf16, #tpu.memory_space<vmem>>, vector<16x32xbf16>
    %cst_24 = arith.constant dense<0.000000e+00> : vector<12x32xf32>
    %58 = tpu.matmul %56, %57, %cst_24 {dimension_numbers = #tpu.dot_dimension_numbers<[1], [0], [0], [1], [0, 0, 1, 1], [], []>} : vector<12x16xbf16>, vector<16x32xbf16>, vector<12x32xf32> -> vector<12x32xf32>
    %59 = arith.addf %34, %58 : vector<12x32xf32>
    %60 = vector.extract_strided_slice %31 {offsets = [0, 16], sizes = [12, 16], strides = [1, 1]} : vector<12x96xf32> to vector<12x16xf32>
    %cst_25 = arith.constant 2.500000e-01 : f32
    %61 = vector.broadcast %cst_25 : f32 to vector<12x16xf32>
    %62 = arith.mulf %60, %61 : vector<12x16xf32>
    %63 = arith.truncf %62 : vector<12x16xf32> to vector<12x16xbf16>
    %64 = vector.extract_strided_slice %31 {offsets = [0, 48], sizes = [12, 16], strides = [1, 1]} : vector<12x96xf32> to vector<12x16xf32>
    %65 = arith.truncf %64 : vector<12x16xf32> to vector<12x16xbf16>
    %66 = vector.extract_strided_slice %31 {offsets = [0, 80], sizes = [12, 16], strides = [1, 1]} : vector<12x96xf32> to vector<12x16xf32>
    %67 = arith.truncf %66 : vector<12x16xf32> to vector<12x16xbf16>
    %cst_26 = arith.constant dense<0.000000e+00> : vector<12x12xf32>
    %68 = tpu.matmul %63, %65, %cst_26 {dimension_numbers = #tpu.dot_dimension_numbers<[1], [1], [0], [0], [0, 0, 1, 0], [], []>} : vector<12x16xbf16>, vector<12x16xbf16>, vector<12x12xf32> -> vector<12x12xf32>
    %cst_27 = arith.constant dense<0xFF800000> : vector<12xf32>
    %69 = vector.multi_reduction <maximumf>, %68, %cst_27 [1] : vector<12x12xf32> to vector<12xf32>
    %70 = vector.shape_cast %69 : vector<12xf32> to vector<12x1xf32>
    %71 = vector.broadcast %70 : vector<12x1xf32> to vector<12x12xf32>
    %72 = arith.subf %68, %71 : vector<12x12xf32>
    %73 = math.exp %72 : vector<12x12xf32>
    %cst_28 = arith.constant dense<0.000000e+00> : vector<12xf32>
    %74 = vector.multi_reduction <add>, %73, %cst_28 [1] : vector<12x12xf32> to vector<12xf32>
    %75 = vector.shape_cast %74 : vector<12xf32> to vector<12x1xf32>
    %76 = tpu.reciprocal %75 {approx = true} : vector<12x1xf32> -> vector<12x1xf32>
    %77 = vector.broadcast %76 : vector<12x1xf32> to vector<12x12xf32>
    %78 = arith.mulf %73, %77 : vector<12x12xf32>
    %79 = arith.truncf %78 : vector<12x12xf32> to vector<12x12xbf16>
    %cst_29 = arith.constant dense<0.000000e+00> : vector<12x16xf32>
    %80 = tpu.matmul %79, %67, %cst_29 {dimension_numbers = #tpu.dot_dimension_numbers<[1], [0], [0], [1], [0, 0, 1, 1], [], []>} : vector<12x12xbf16>, vector<12x16xbf16>, vector<12x16xf32> -> vector<12x16xf32>
    %81 = arith.truncf %80 : vector<12x16xf32> to vector<12x16xbf16>
    %c16 = arith.constant 16 : index
    %c0_30 = arith.constant 0 : index
    %82 = vector.load %arg6[%c16, %c0_30] : memref<32x32xbf16, #tpu.memory_space<vmem>>, vector<16x32xbf16>
    %cst_31 = arith.constant dense<0.000000e+00> : vector<12x32xf32>
    %83 = tpu.matmul %81, %82, %cst_31 {dimension_numbers = #tpu.dot_dimension_numbers<[1], [0], [0], [1], [0, 0, 1, 1], [], []>} : vector<12x16xbf16>, vector<16x32xbf16>, vector<12x32xf32> -> vector<12x32xf32>
    %84 = arith.addf %59, %83 : vector<12x32xf32>
    %c0_32 = arith.constant 0 : index
    %c0_33 = arith.constant 0 : index
    %c0_34 = arith.constant 0 : index
    %85 = vector.load %arg8[%c0_32, %c0_33, %c0_34] : memref<1x12x32xf32, #tpu.memory_space<vmem>>, vector<1x12x32xf32>
    %86 = vector.shape_cast %85 : vector<1x12x32xf32> to vector<12x32xf32>
    %87 = vector.shape_cast %84 : vector<12x32xf32> to vector<1x12x32xf32>
    tpu.vector_store %arg8[%c0_32, %c0_33, %c0_34], %87 {strides = array<i32>} : memref<1x12x32xf32, #tpu.memory_space<vmem>>, vector<1x12x32xf32>,
    return
  }
  func.func @transform_0(%arg0: i32) -> (i32, i32, i32) {
    %c0_i32 = arith.constant 0 : i32
    %c0_i32_0 = arith.constant 0 : i32
    %c0_i32_1 = arith.constant 0 : i32
    return %arg0, %c0_i32, %c0_i32_0 : i32, i32, i32
  }
  func.func @transform_1(%arg0: i32) -> (i32, i32) {
    %c0_i32 = arith.constant 0 : i32
    %c0_i32_0 = arith.constant 0 : i32
    %c0_i32_1 = arith.constant 0 : i32
    return %c0_i32, %c0_i32_0 : i32, i32
  }
  func.func @transform_2(%arg0: i32) -> (i32, i32) {
    %c0_i32 = arith.constant 0 : i32
    %c0_i32_0 = arith.constant 0 : i32
    %c0_i32_1 = arith.constant 0 : i32
    return %c0_i32, %c0_i32_0 : i32, i32
  }
  func.func @transform_3(%arg0: i32) -> (i32, i32) {
    %c0_i32 = arith.constant 0 : i32
    %c0_i32_0 = arith.constant 0 : i32
    %c0_i32_1 = arith.constant 0 : i32
    return %c0_i32, %c0_i32_0 : i32, i32
  }
  func.func @transform_4(%arg0: i32) -> (i32, i32) {
    %c0_i32 = arith.constant 0 : i32
    %c0_i32_0 = arith.constant 0 : i32
    %c0_i32_1 = arith.constant 0 : i32
    return %c0_i32, %c0_i32_0 : i32, i32
  }
  func.func @transform_5(%arg0: i32) -> (i32, i32) {
    %c0_i32 = arith.constant 0 : i32
    %c0_i32_0 = arith.constant 0 : i32
    %c0_i32_1 = arith.constant 0 : i32
    return %c0_i32, %c0_i32_0 : i32, i32
  }
  func.func @transform_6(%arg0: i32) -> (i32, i32) {
    %c0_i32 = arith.constant 0 : i32
    %c0_i32_0 = arith.constant 0 : i32
    %c0_i32_1 = arith.constant 0 : i32
    return %c0_i32, %c0_i32_0 : i32, i32
  }
  func.func @transform_7(%arg0: i32) -> (i32, i32, i32) {
    %c0_i32 = arith.constant 0 : i32
    %c0_i32_0 = arith.constant 0 : i32
    %c0_i32_1 = arith.constant 0 : i32
    return %arg0, %c0_i32, %c0_i32_0 : i32, i32, i32
  }
}

module attributes {stable_mosaic.version = 11 : i64} {
  func.func @_ln_linear_kernel(%arg0: i32, %arg1: memref<16x32xf32, #tpu.memory_space<vmem>>, %arg2: memref<1x32xf32, #tpu.memory_space<vmem>>, %arg3: memref<1x32xf32, #tpu.memory_space<vmem>>, %arg4: memref<32x48xbf16, #tpu.memory_space<vmem>>, %arg5: memref<1x48xf32, #tpu.memory_space<vmem>>, %arg6: memref<16x48xf32, #tpu.memory_space<vmem>>) attributes {dimension_semantics = [#tpu.dimension_semantics<parallel>], iteration_bounds = array<i64: 1>, scalar_prefetch = 0 : i64, scratch_operands = 0 : i64, tpu.core_type = #tpu.core_type<tc>, window_params = [{transform_indices = @transform_0, window_bounds = array<i64: 16, 32>}, {pipeline_mode = #tpu.pipeline_mode<synchronous>, transform_indices = @transform_1, window_bounds = array<i64: 1, 32>}, {pipeline_mode = #tpu.pipeline_mode<synchronous>, transform_indices = @transform_2, window_bounds = array<i64: 1, 32>}, {pipeline_mode = #tpu.pipeline_mode<synchronous>, transform_indices = @transform_3, window_bounds = array<i64: 32, 48>}, {pipeline_mode = #tpu.pipeline_mode<synchronous>, transform_indices = @transform_4, window_bounds = array<i64: 1, 48>}, {transform_indices = @transform_5, window_bounds = array<i64: 16, 48>}]} {
    %c0 = arith.constant 0 : index
    %c0_0 = arith.constant 0 : index
    %0 = vector.load %arg1[%c0, %c0_0] : memref<16x32xf32, #tpu.memory_space<vmem>>, vector<16x32xf32>
    %c0_1 = arith.constant 0 : index
    %c0_2 = arith.constant 0 : index
    %1 = vector.load %arg2[%c0_1, %c0_2] : memref<1x32xf32, #tpu.memory_space<vmem>>, vector<1x32xf32>
    %c0_3 = arith.constant 0 : index
    %c0_4 = arith.constant 0 : index
    %2 = vector.load %arg3[%c0_3, %c0_4] : memref<1x32xf32, #tpu.memory_space<vmem>>, vector<1x32xf32>
    %cst = arith.constant dense<0.000000e+00> : vector<16xf32>
    %3 = vector.multi_reduction <add>, %0, %cst [1] : vector<16x32xf32> to vector<16xf32>
    %4 = vector.shape_cast %3 : vector<16xf32> to vector<16x1xf32>
    %cst_5 = arith.constant 3.200000e+01 : f32
    %5 = vector.broadcast %cst_5 : f32 to vector<16x1xf32>
    %6 = arith.divf %4, %5 : vector<16x1xf32>
    %7 = vector.broadcast %6 : vector<16x1xf32> to vector<16x32xf32>
    %8 = arith.subf %0, %7 : vector<16x32xf32>
    %9 = arith.mulf %8, %8 : vector<16x32xf32>
    %cst_6 = arith.constant dense<0.000000e+00> : vector<16xf32>
    %10 = vector.multi_reduction <add>, %9, %cst_6 [1] : vector<16x32xf32> to vector<16xf32>
    %11 = vector.shape_cast %10 : vector<16xf32> to vector<16x1xf32>
    %cst_7 = arith.constant 3.200000e+01 : f32
    %12 = vector.broadcast %cst_7 : f32 to vector<16x1xf32>
    %13 = arith.divf %11, %12 : vector<16x1xf32>
    %14 = vector.broadcast %6 : vector<16x1xf32> to vector<16x32xf32>
    %15 = arith.subf %0, %14 : vector<16x32xf32>
    %cst_8 = arith.constant 9.99999974E-6 : f32
    %16 = vector.broadcast %cst_8 : f32 to vector<16x1xf32>
    %17 = arith.addf %13, %16 : vector<16x1xf32>
    %18 = math.rsqrt %17 : vector<16x1xf32>
    %19 = vector.broadcast %18 : vector<16x1xf32> to vector<16x32xf32>
    %20 = arith.mulf %15, %19 : vector<16x32xf32>
    %21 = vector.broadcast %1 : vector<1x32xf32> to vector<16x32xf32>
    %22 = arith.mulf %20, %21 : vector<16x32xf32>
    %23 = vector.broadcast %2 : vector<1x32xf32> to vector<16x32xf32>
    %24 = arith.addf %22, %23 : vector<16x32xf32>
    %25 = arith.truncf %24 : vector<16x32xf32> to vector<16x32xbf16>
    %c0_9 = arith.constant 0 : index
    %c0_10 = arith.constant 0 : index
    %26 = vector.load %arg4[%c0_9, %c0_10] : memref<32x48xbf16, #tpu.memory_space<vmem>>, vector<32x48xbf16>
    %cst_11 = arith.constant dense<0.000000e+00> : vector<16x48xf32>
    %27 = tpu.matmul %25, %26, %cst_11 {dimension_numbers = #tpu.dot_dimension_numbers<[1], [0], [0], [1], [0, 0, 1, 1], [], []>} : vector<16x32xbf16>, vector<32x48xbf16>, vector<16x48xf32> -> vector<16x48xf32>
    %c0_12 = arith.constant 0 : index
    %c0_13 = arith.constant 0 : index
    %28 = vector.load %arg5[%c0_12, %c0_13] : memref<1x48xf32, #tpu.memory_space<vmem>>, vector<1x48xf32>
    %29 = vector.broadcast %28 : vector<1x48xf32> to vector<16x48xf32>
    %30 = arith.addf %27, %29 : vector<16x48xf32>
    %c0_14 = arith.constant 0 : index
    %c0_15 = arith.constant 0 : index
    %31 = vector.load %arg6[%c0_14, %c0_15] : memref<16x48xf32, #tpu.memory_space<vmem>>, vector<16x48xf32>
    tpu.vector_store %arg6[%c0_14, %c0_15], %30 {strides = array<i32>} : memref<16x48xf32, #tpu.memory_space<vmem>>, vector<16x48xf32>,
    return
  }
  func.func @transform_0(%arg0: i32) -> (i32, i32) {
    %c0_i32 = arith.constant 0 : i32
    %c0_i32_0 = arith.constant 0 : i32
    return %arg0, %c0_i32 : i32, i32
  }
  func.func @transform_1(%arg0: i32) -> (i32, i32) {
    %c0_i32 = arith.constant 0 : i32
    %c0_i32_0 = arith.constant 0 : i32
    %c0_i32_1 = arith.constant 0 : i32
    return %c0_i32, %c0_i32_0 : i32, i32
  }
  func.func @transform_2(%arg0: i32) -> (i32, i32) {
    %c0_i32 = arith.constant 0 : i32
    %c0_i32_0 = arith.constant 0 : i32
    %c0_i32_1 = arith.constant 0 : i32
    return %c0_i32, %c0_i32_0 : i32, i32
  }
  func.func @transform_3(%arg0: i32) -> (i32, i32) {
    %c0_i32 = arith.constant 0 : i32
    %c0_i32_0 = arith.constant 0 : i32
    %c0_i32_1 = arith.constant 0 : i32
    return %c0_i32, %c0_i32_0 : i32, i32
  }
  func.func @transform_4(%arg0: i32) -> (i32, i32) {
    %c0_i32 = arith.constant 0 : i32
    %c0_i32_0 = arith.constant 0 : i32
    %c0_i32_1 = arith.constant 0 : i32
    return %c0_i32, %c0_i32_0 : i32, i32
  }
  func.func @transform_5(%arg0: i32) -> (i32, i32) {
    %c0_i32 = arith.constant 0 : i32
    %c0_i32_0 = arith.constant 0 : i32
    return %arg0, %c0_i32 : i32, i32
  }
}

</mosaic_0001>

<bundles_post_ra>
// kernel: vit_predictor_forward.6
= control target key start
LH: loop header
LB: loop body
LE: loop exit
PB: predicated region body
PF: predicated region fallthrough
CT: control target
= control target key end

     0   :  { %vm49_vm0 = vcmask 392192   ;;  %vm71_vm1 = vcmask 261120   ;;  %s150_s1 = inlined_call_operand.vmem [shape: bf16[48,32], index: 1, kind: input, shape index: {}]   ;;  %s151_s2 = inlined_call_operand.vmem [shape: f32[1,32], index: 2, kind: input, shape index: {}]   ;;  %s152_s0 = inlined_call_operand.vmem [shape: f32[16,48], index: 0, kind: input, shape index: {}]   ;;  %s153_s3 = inlined_call_operand.vmem [shape: f32[16,32], index: 3, kind: input, shape index: {}]   ;;  %s154_s4 = inlined_call_operand.vmem [shape: f32[16,32], index: 4, kind: output, shape index: {}]  }
   0x1   :  { %v93_v0 = vld [vmem:[%s150_s1 + $0x10] sm:$0xff]  ;;  %v92_v1 = vld [vmem:[%s150_s1 + $0x8] sm:$0xff]  ;;  %v91_v2 = vld [vmem:[%s150_s1] sm:$0xff] }
   0x2   :  { %58 = vmatpush.bf16.msra.mxu0 %v93_v0  ;;  %v18_v3 = vld [vmem:[%s152_s0] sm:$0xff]  ;;  %v19_v4 = vld [vmem:[%s152_s0 + $0x8] sm:$0xff] }
   0x3   :  { %v20_v5 = vpack.c.bf16 %v19_v4, %v18_v3  ;;  %v94_v6 = vld [vmem:[%s151_s2] ss:$0 sm:$0xff]  ;;  %v68_v12 = vld [vmem:[%s153_s3 + $0x8] sm:$0xff] }
   0x4   :  { %v67_v8 = vld [vmem:[%s153_s3] sm:$0xff] }
   0x6   :  { %59 = vmatpush.bf16.msra.mxu0 %v92_v1 }
   0xa   :  { %60 = vmatpush.bf16.msra.mxu0 %v91_v2 }
   0xd   :  { %90 = vmatmul.msk.bf16.vlgmr.msra.gmra.mxu0 %vm49_vm0, %v20_v5 }
  0x8a   :  { %v62_v7 = vpop.f32.mrf.mxu0 }
  0x8b   :  { %v63_v9 = vadd.f32 %v94_v6, %v62_v7 }
  0x8d   :  { %v69_v10 = vadd.f32 %v67_v8, %v63_v9 }
  0x8f   :  { %72 = vst.msk [vmem:[%s154_s4] sm:$0xff] %vm71_vm1, %v69_v10 }
  0x92   :  { %v64_v11 = vpop.f32.mrf.mxu0 }
  0x93   :  { %v65_v13 = vadd.f32 %v94_v6, %v64_v11 }
  0x95   :  { %v70_v14 = vadd.f32 %v68_v12, %v65_v13 }
  0x97   :  { %73 = vst.msk [vmem:[%s154_s4 + $0x8] sm:$0xff] %vm71_vm1, %v70_v14 }

// kernel: vit_predictor_forward.7
= control target key start
LH: loop header
LB: loop body
LE: loop exit
PB: predicated region body
PF: predicated region fallthrough
CT: control target
= control target key end

     0   :  { %s784_s24 = smov 0   ;;  %s873_s0 = inlined_call_operand.vmem [shape: f32[4,12,32], index: 0, kind: input, shape index: {}]   ;;  %s874_s1 = inlined_call_operand.vmem [shape: f32[1,32], index: 1, kind: input, shape index: {}]   ;;  %s875_s2 = inlined_call_operand.vmem [shape: f32[1,32], index: 2, kind: input, shape index: {}]   ;;  %s876_s3 = inlined_call_operand.vmem [shape: bf16[32,96], index: 3, kind: input, shape index: {}]   ;;  %s877_s4 = inlined_call_operand.vmem [shape: f32[1,96], index: 4, kind: input, shape index: {}]   ;;  %s878_s5 = inlined_call_operand.vmem [shape: bf16[32,32], index: 5, kind: input, shape index: {}]   ;;  %s879_s6 = inlined_call_operand.vmem [shape: f32[1,32], index: 6, kind: input, shape index: {}]   ;;  %s880_s7 = inlined_call_operand.vmem [shape: f32[4,12,32], index: 7, kind: output, shape index: {}]  }
   0x1 LB: > { %s650_s25 = sadd.s32 4294967295, %s736_s24   ;;  %p654_p0 = scmp.ge.s32.totalorder %s736_s24, 1  ;;  %s736_s24 = sphi %s784_s24, %s17_s24  }
   0x2   : > { %p237_p1 = scmp.lt.s32.totalorder %s736_s24, 5 }
   0x4   : > { %p238_p2 = pnand %p654_p0, %p237_p1 }
   0x5   : > { %p269_p3 = scmp.lt.s32.totalorder (!%p238_p2), %s650_s25, 3  ;;  %s739_s17 = smov (!%p238_p2), 64  }
   0x6   : > { %241 = sbr.rel (%p238_p2) target bundleno = 1612 (0x64c), region = 48  ;;  %s740_s18 = smov (!%p238_p2), 96  }
   0x7   : > { %s741_s19 = smov (!%p238_p2), 112   ;;  %s742_s20 = smov (!%p238_p2), 80  }
   0x8   : > { %s743_s23 = smov (!%p238_p2), 48  }
   0xb   : > { %s882_s25 = smov (!%p269_p3, %s650_s25), 3  ;;  %vm284_vm0 = vcmask 261120   ;;  %vm288_vm1 = vcmask 257024   ;;  %v738_v4 = vmov 32.0   ;;  %v687_v21 = vld [vmem:[%s876_s3 + $0x8] sm:$0xff]  ;;  %v686_v23 = vld [vmem:[%s876_s3] sm:$0xff] }
   0xc   : > { %s684_s26 = sshll.u32 %s882_s25, 4  ;;  %708 = vrcp.f32 %v738_v4  ;;  %377 = vmatpush.bf16.msra.mxu0 %v687_v21  ;;  %v704_v42 = vld [vmem:[%s874_s1] ss:$0 sm:$0xff]  ;;  %vm398_vm9 = vcmask 130048   ;;  %vm449_vm10 = vcmask 1045504   ;;  %vm419_vm11 = vcmask 97280  }
   0xd   : > { %s273_s29 = scalar_lea.vmem %s873_s0, %s684_s26  ;;  %v705_v47 = vld [vmem:[%s875_s2] ss:$0 sm:$0xff]  ;;  %vm423_vm12 = vcmask 93184   ;;  %s278_s10 = scalar_lea.vmem %s880_s7, %s684_s26 }
   0xe   : > { %v800_v0 = vld [vmem:[%s273_s29] sm:$0xff]  ;;  %v804_v2 = vld [vmem:[%s273_s29 + $0x8] sm:$0xf] }
   0xf   : > { %v285_v1 = vsel %vm284_vm0, %v800_v0, 0.0  ;;  %v289_v3 = vsel %vm288_vm1, %v804_v2, 0.0  ;;  %v706_v53 = vld [vmem:[%s877_s4] ss:$0 sm:$0xff] }
  0x10   : > { %286 = vadd.xlane.f32.xlu0 %v285_v1  ;;  %378 = vmatpush.bf16.msra.mxu0 %v686_v23 }
  0x12   : > { %v709_v5 = vpop.eup %708 }
  0x13   : > { %v293_v6 = vmul.f32 32.0, %v709_v5  ;;  %vm297_vm2 = vweird.f32 %v709_v5 }
  0x15   : > { %v294_v7 = vsub.f32 1.0, %v293_v6 }
  0x17   : > { %v295_v8 = vmul.f32 %v709_v5, %v294_v7 }
  0x18   : > { %290 = vadd.xlane.f32.xlu0 %v289_v3 }
  0x19   : > { %v296_v9 = vadd.f32 %v709_v5, %v295_v8 }
  0x1b   : > { %v298_v10 = vsel %vm297_vm2, %v709_v5, %v296_v9 }
  0x83   : > { %v287_v11 = vpop.xlane.xlu0 %286 }
  0x84   : > { %v299_v12 = vmul.f32 %v298_v10, %v287_v11 }
  0x86   : > { %v301_v13 = vsub.f32 %v800_v0, %v299_v12 }
  0x88   : > { %v303_v14 = vmul.f32 %v301_v13, %v301_v13 }
  0x8a   : > { %v305_v15 = vsel %vm284_vm0, %v303_v14, 0.0 }
  0x8b   : > { %306 = vadd.xlane.f32.xlu1 %v305_v15  ;;  %v291_v16 = vpop.xlane.xlu0 %290 }
  0x8c   : > { %v300_v17 = vmul.f32 %v298_v10, %v291_v16 }
  0x8e   : > { %v302_v18 = vsub.f32 %v804_v2, %v300_v17 }
  0x90   : > { %v304_v19 = vmul.f32 %v302_v18, %v302_v18 }
  0x92   : > { %v308_v20 = vsel %vm288_vm1, %v304_v19, 0.0 }
  0x93   : > { %309 = vadd.xlane.f32.xlu1 %v308_v20 }
  0xfe   : > { %v307_v22 = vpop.xlane.xlu1 %306 }
  0xff   : > { %v311_v24 = vmul.f32 %v307_v22, %v298_v10 }
 0x101   : > { %v313_v25 = vadd.f32 1e-05, %v311_v24 }
 0x103   : > { %710 = vrsqrt.f32 %v313_v25  ;;  %vm321_vm4 = vweird.f32 %v313_v25 }
 0x106   : > { %v310_v26 = vpop.xlane.xlu1 %309 }
 0x107   : > { %v312_v27 = vmul.f32 %v310_v26, %v298_v10 }
 0x109   : > { %v711_v28 = vpop.eup %710  ;;  %v314_v29 = vadd.f32 1e-05, %v312_v27  ;;  %v688_v27 = vld [vmem:[%s878_s5] sm:$0xff] }
 0x10a   : > { %v316_v30 = vmul.f32 %v711_v28, %v313_v25  ;;  %vm322_vm3 = vweird.f32 %v711_v28  ;;  %486 = vmatpush.bf16.msra.mxu3 %v688_v27 }
 0x10b   : > { %712 = vrsqrt.f32 %v314_v29  ;;  %vm323_vm5 = vmor %vm321_vm4, %vm322_vm3  ;;  %vm331_vm7 = vweird.f32 %v314_v29 }
 0x10c   : > { %v317_v31 = vmul.f32 %v711_v28, %v316_v30 }
 0x10e   : > { %v318_v32 = vmul.f32 0.5, %v317_v31 }
 0x110   : > { %v319_v33 = vsub.f32 1.5, %v318_v32 }
 0x111   : > { %v713_v34 = vpop.eup %712 }
 0x112   : > { %v320_v35 = vmul.f32 %v711_v28, %v319_v33  ;;  %v326_v36 = vmul.f32 %v713_v34, %v314_v29  ;;  %vm332_vm6 = vweird.f32 %v713_v34 }
 0x113   : > { %vm333_vm8 = vmor %vm331_vm7, %vm332_vm6 }
 0x114   : > { %v327_v37 = vmul.f32 %v713_v34, %v326_v36  ;;  %v324_v38 = vsel %vm323_vm5, %v711_v28, %v320_v35 }
 0x115   : > { %v335_v41 = vmul.f32 %v324_v38, %v301_v13 }
 0x116   : > { %v328_v39 = vmul.f32 0.5, %v327_v37 }
 0x117   : > { %v340_v46 = vmul.f32 %v704_v42, %v335_v41 }
 0x118   : > { %v329_v40 = vsub.f32 1.5, %v328_v39 }
 0x119   : > { %v345_v49 = vadd.f32 %v705_v47, %v340_v46 }
 0x11a   : > { %v330_v43 = vmul.f32 %v713_v34, %v329_v40 }
 0x11c   : > { %v334_v44 = vsel %vm333_vm8, %v713_v34, %v330_v43 }
 0x11d   : > { %v336_v45 = vmul.f32 %v334_v44, %v302_v18 }
 0x11f   : > { %v341_v48 = vmul.f32 %v704_v42, %v336_v45 }
 0x121   : > { %v346_v50 = vadd.f32 %v705_v47, %v341_v48 }
 0x123   : > { %v347_v51 = vpack.c.bf16 %v346_v50, %v345_v49 }
 0x125   : > { %667 = vmatmul.msk.bf16.vlgmr.msra.gmra.mxu0 %vm284_vm0, %v347_v51 }
 0x1a2   : > { %v380_v52 = vpop.f32.mrf.mxu0 }
 0x1a3   : > { %v381_v54 = vadd.f32 %v706_v53, %v380_v52 }
 0x1a5   : > { %v391_v57 = vmul.f32 0.25, %v381_v54 }
 0x1aa   : > { %v382_v55 = vpop.f32.mrf.mxu0 }
 0x1ab   : > { %v383_v56 = vadd.f32 %v706_v53, %v382_v55 }
 0x1ad   : > { %v392_v58 = vmul.f32 0.25, %v383_v56  ;;  %v828_v59 = vpack.c.bf16 %v383_v56, %v381_v54  ;;  %v689_v54 = vld [vmem:[%s878_s5 + $0x8] sm:$0xff] }
 0x1ae   : > { %584 = vmatpush.bf16.msrb.mxu0 %v689_v54 }
 0x1af   : > { %444 = vrot.lane.b32.xlu1 %v828_v59, %s739_s17  ;;  %396 = vrot.lane.b32.xlu2 %v828_v59, %s740_s18  ;;  %v393_v60 = vpack.c.bf16 %v392_v58, %v391_v57 }
 0x209   : > { %v397_v61 = vpop.permute.xlu2 %396 }
 0x20a   : > { %v403_v62 = vsel %vm398_vm9, %v397_v61, 0 }
 0x20b   : > { %412 = vmatpush.bf16.xpose.msra.mxu1 %v403_v62 }
 0x212   : > { %668 = vmatmul.msk.bf16.vlgmr.msra.gmra.mxu1 %vm398_vm9, %v393_v60 }
 0x221   : > { %v445_v63 = vpop.permute.xlu1 %444 }
 0x222   : > { %v451_v1 = vsel %vm449_vm10, %v445_v63, 0 }
 0x223   : > { %460 = vmatpush.bf16.msra.mxu2 %v451_v1 }
 0x28f   : > { %v414_v3 = vpop.f32.mrf.mxu1 }
 0x290   : > { %v420_v4 = vsel %vm419_vm11, %v414_v3, -inf }
 0x291   : > { %421 = vmax.xlane.f32.xlu2 %v420_v4 }
 0x297   : > { %v416_v5 = vpop.f32.mrf.mxu1 }
 0x298   : > { %v424_v6 = vsel %vm423_vm12, %v416_v5, -inf }
 0x299   : > { %425 = vmax.xlane.f32.xlu0 %v424_v6 }
 0x304   : > { %v422_v7 = vpop.xlane.xlu2 %421 }
 0x305   : > { %v427_v8 = vsub.f32 %v414_v3, %v422_v7 }
 0x307   : > { %v429_v9 = vmul.f32 1.442695, %v427_v8 }
 0x309   : > { %714 = vpow2.f32 %v429_v9 }
 0x30c   : > { %v426_v10 = vpop.xlane.xlu0 %425 }
 0x30d   : > { %v428_v11 = vsub.f32 %v416_v5, %v426_v10 }
 0x30f   : > { %v715_v12 = vpop.eup %714  ;;  %v431_v13 = vmul.f32 1.442695, %v428_v11 }
 0x310   : > { %v433_v14 = vsel %vm419_vm11, %v715_v12, 0.0 }
 0x311   : > { %716 = vpow2.f32 %v431_v13  ;;  %434 = vadd.xlane.f32.xlu1 %v433_v14 }
 0x317   : > { %v717_v15 = vpop.eup %716 }
 0x318   : > { %v436_v16 = vsel %vm423_vm12, %v717_v15, 0.0 }
 0x319   : > { %437 = vadd.xlane.f32.xlu0 %v436_v16 }
 0x32a   : > { %496 = vrot.lane.b32.xlu1 %v393_v60, %s741_s19  ;;  %v707_v60 = vld [vmem:[%s879_s6] ss:$0 sm:$0xff] }
 0x32b   : > { %v389_v61 = vadd.f32 %v707_v60, %v800_v0  ;;  %v390_v3 = vadd.f32 %v707_v60, %v804_v2 }
 0x32d   : > { %498 = vrot.lane.b32.xlu0 %v828_v59, %s742_s20 }
 0x384   : > { %v435_v17 = vpop.xlane.xlu1 %434 }
 0x385   : > { %718 = vrcp.f32 %v435_v17 }
 0x38b   : > { %v719_v19 = vpop.eup %718 }
 0x38c   : > { %v438_v18 = vpop.xlane.xlu0 %437  ;;  %v441_v21 = vmul.f32 %v719_v19, %v715_v12 }
 0x38d   : > { %720 = vrcp.f32 %v438_v18 }
 0x393   : > { %v721_v20 = vpop.eup %720 }
 0x394   : > { %v442_v22 = vmul.f32 %v721_v20, %v717_v15 }
 0x396   : > { %v443_v23 = vpack.c.bf16 %v442_v22, %v441_v21 }
 0x398   : > { %669 = vmatmul.msk.bf16.vlgmr.msra.gmra.mxu2 %vm419_vm11, %v443_v23 }
 0x39c   : > { %v497_v26 = vpop.permute.xlu1 %496 }
 0x39f   : > { %v499_v24 = vpop.permute.xlu0 %498 }
 0x3a0   : > { %v504_v25 = vsel %vm398_vm9, %v499_v24, 0 }
 0x3a1   : > { %513 = vmatpush.bf16.xpose.msrb.mxu2 %v504_v25 }
 0x3a8   : > { %675 = vmatmul.msk.bf16.vlgmr.msrb.gmra.mxu2 %vm398_vm9, %v497_v26 }
 0x41b   : > { %v462_v28 = vpop.f32.mrf.mxu2 }
 0x423   : > { %v464_v29 = vpop.f32.mrf.mxu2 }
 0x424   : > { %v467_v30 = vpack.c.bf16 %v464_v29, %v462_v28 }
 0x426   : > { %674 = vmatmul.msk.bf16.vlgmr.msra.gmra.mxu3 %vm398_vm9, %v467_v30 }
 0x42b   : > { %v515_v31 = vpop.f32.mrf.mxu2 }
 0x42c   : > { %v520_v32 = vsel %vm419_vm11, %v515_v31, -inf }
 0x42d   : > { %521 = vmax.xlane.f32.xlu2 %v520_v32 }
 0x433   : > { %v517_v33 = vpop.f32.mrf.mxu2 }
 0x434   : > { %v523_v34 = vsel %vm423_vm12, %v517_v33, -inf }
 0x435   : > { %524 = vmax.xlane.f32.xlu0 %v523_v34 }
 0x4a0   : > { %v522_v35 = vpop.xlane.xlu2 %521 }
 0x4a1   : > { %v526_v36 = vsub.f32 %v515_v31, %v522_v35 }
 0x4a3   : > { %v528_v37 = vmul.f32 1.442695, %v526_v36 }
 0x4a5   : > { %722 = vpow2.f32 %v528_v37 }
 0x4a8   : > { %v525_v38 = vpop.xlane.xlu0 %524 }
 0x4a9   : > { %v527_v39 = vsub.f32 %v517_v33, %v525_v38  ;;  %v488_v55 = vpop.f32.mrf.mxu3 }
 0x4aa   : > { %v493_v62 = vadd.f32 %v488_v55, %v389_v61 }
 0x4ab   : > { %v723_v40 = vpop.eup %722  ;;  %v530_v41 = vmul.f32 1.442695, %v527_v39 }
 0x4ac   : > { %v532_v42 = vsel %vm419_vm11, %v723_v40, 0.0 }
 0x4ad   : > { %724 = vpow2.f32 %v530_v41  ;;  %533 = vadd.xlane.f32.xlu1 %v532_v42 }
 0x4b1   : > { %v490_v56 = vpop.f32.mrf.mxu3 }
 0x4b2   : > { %v494_v4 = vadd.f32 %v490_v56, %v390_v3 }
 0x4b3   : > { %v725_v43 = vpop.eup %724 }
 0x4b4   : > { %v535_v44 = vsel %vm423_vm12, %v725_v43, 0.0 }
 0x4b5   : > { %536 = vadd.xlane.f32.xlu2 %v535_v44 }
 0x4cd   : > { %543 = vrot.lane.b32.xlu2 %v828_v59, %s743_s23 }
 0x520   : > { %v534_v45 = vpop.xlane.xlu1 %533 }
 0x521   : > { %726 = vrcp.f32 %v534_v45 }
 0x527   : > { %v727_v47 = vpop.eup %726 }
 0x528   : > { %v537_v46 = vpop.xlane.xlu2 %536  ;;  %v540_v49 = vmul.f32 %v727_v47, %v723_v40 }
 0x529   : > { %728 = vrcp.f32 %v537_v46 }
 0x52f   : > { %v729_v48 = vpop.eup %728 }
 0x530   : > { %v541_v50 = vmul.f32 %v729_v48, %v725_v43  ;;  %v544_v51 = vpop.permute.xlu2 %543 }
 0x531   : > { %v549_v52 = vsel %vm449_vm10, %v544_v51, 0 }
 0x532   : > { %558 = vmatpush.bf16.msrb.mxu3 %v549_v52  ;;  %v542_v53 = vpack.c.bf16 %v541_v50, %v540_v49 }
 0x535   : > { %676 = vmatmul.msk.bf16.vlgmr.msrb.gmra.mxu3 %vm419_vm11, %v542_v53 }
 0x5b8   : > { %v560_v57 = vpop.f32.mrf.mxu3 }
 0x5c0   : > { %v562_v58 = vpop.f32.mrf.mxu3 }
 0x5c1   : > { %v565_v59 = vpack.c.bf16 %v562_v58, %v560_v57 }
 0x5c3   : > { %681 = vmatmul.msk.bf16.vlgmr.msrb.gmra.mxu0 %vm398_vm9, %v565_v59 }
 0x640   : > { %v586_v63 = vpop.f32.mrf.mxu0 }
 0x641   : > { %v591_v1 = vadd.f32 %v586_v63, %v493_v62 }
 0x643   : > { %593 = vst.msk [vmem:[%s278_s10] sm:$0xff] %vm284_vm0, %v591_v1 }
 0x648   : > { %v588_v5 = vpop.f32.mrf.mxu0 }
 0x649   : > { %v592_v6 = vadd.f32 %v588_v5, %v494_v4 }
 0x64b   : > { %594 = vst.msk [vmem:[%s278_s10 + $0x8] sm:$0xf] %vm288_vm1, %v592_v6 }
 0x64c PF: > { %s17_s24 = sadd.s32 1, %s736_s24  }
 0x64d   : > { %p14_p4 = scmp.ge.s32.totalorder %s17_s24, 6  }
 0x64f   :  { %16 = sbr.rel (!%p14_p4) target bundleno = 1 (0x1), region = 78 }

// kernel: vit_predictor_forward.8
= control target key start
LH: loop header
LB: loop body
LE: loop exit
PB: predicated region body
PF: predicated region fallthrough
CT: control target
= control target key end

     0   :  { %vm35_vm0 = vcmask 261120   ;;  %v733_v12 = vmov 32.0   ;;  %s1087_s0 = inlined_call_operand.vmem [shape: f32[48,32], index: 0, kind: input, shape index: {}]   ;;  %s1088_s1 = inlined_call_operand.vmem [shape: f32[1,32], index: 1, kind: input, shape index: {}]   ;;  %s1089_s2 = inlined_call_operand.vmem [shape: f32[1,32], index: 2, kind: input, shape index: {}]   ;;  %s1090_s4 = inlined_call_operand.vmem [shape: f32[1,128], index: 4, kind: input, shape index: {}]   ;;  %s1091_s3 = inlined_call_operand.vmem [shape: bf16[32,128], index: 3, kind: input, shape index: {}]   ;;  %s1092_s6 = inlined_call_operand.vmem [shape: f32[1,32], index: 6, kind: input, shape index: {}]   ;;  %s1093_s5 = inlined_call_operand.vmem [shape: bf16[128,32], index: 5, kind: input, shape index: {}]   ;;  %s1094_s7 = inlined_call_operand.vmem [shape: f32[48,32], index: 7, kind: output, shape index: {}]  }
   0x1   :  { %v31_v0 = vld [vmem:[%s1087_s0 + $0x20] sm:$0xff]  ;;  %v29_v1 = vld [vmem:[%s1087_s0 + $0x10] sm:$0xff]  ;;  %v32_v6 = vld [vmem:[%s1087_s0 + $0x28] sm:$0xff]  ;;  %704 = vrcp.f32 %v733_v12 }
   0x2   :  { %v783_v2 = vld [vmem:[%s1087_s0] sm:$0xff]  ;;  %v48_v3 = vsel %vm35_vm0, %v31_v0, 0.0  ;;  %v42_v4 = vsel %vm35_vm0, %v29_v1, 0.0  ;;  %v795_v7 = vld [vmem:[%s1087_s0 + $0x18] sm:$0xff]  ;;  %v800_v8 = vld [vmem:[%s1087_s0 + $0x8] sm:$0xff]  ;;  %v51_v9 = vsel %vm35_vm0, %v32_v6, 0.0 }
   0x3   :  { %v36_v5 = vsel %vm35_vm0, %v783_v2, 0.0  ;;  %49 = vadd.xlane.f32.xlu2 %v48_v3  ;;  %43 = vadd.xlane.f32.xlu1 %v42_v4  ;;  %v45_v10 = vsel %vm35_vm0, %v795_v7, 0.0  ;;  %v39_v11 = vsel %vm35_vm0, %v800_v8, 0.0  ;;  %v674_v49 = vld [vmem:[%s1091_s3 + $0x8] sm:$0xff]  ;;  %v673_v55 = vld [vmem:[%s1091_s3] sm:$0xff] }
   0x4   :  { %37 = vadd.xlane.f32.xlu0 %v36_v5  ;;  %231 = vmatpush.bf16.msra.mxu0 %v674_v49 }
   0x7   :  { %v705_v13 = vpop.eup %704 }
   0x8   :  { %v55_v14 = vmul.f32 32.0, %v705_v13  ;;  %vm59_vm1 = vweird.f32 %v705_v13  ;;  %232 = vmatpush.bf16.msra.mxu0 %v673_v55 }
   0xa   :  { %v56_v15 = vsub.f32 1.0, %v55_v14 }
   0xb   :  { %52 = vadd.xlane.f32.xlu2 %v51_v9  ;;  %46 = vadd.xlane.f32.xlu1 %v45_v10 }
   0xc   :  { %40 = vadd.xlane.f32.xlu0 %v39_v11  ;;  %v57_v16 = vmul.f32 %v705_v13, %v56_v15 }
   0xe   :  { %v58_v17 = vadd.f32 %v705_v13, %v57_v16 }
  0x10   :  { %v807_v18 = vsel %vm59_vm1, %v705_v13, %v58_v17 }
  0x76   :  { %v50_v19 = vpop.xlane.xlu2 %49  ;;  %v44_v20 = vpop.xlane.xlu1 %43 }
  0x77   :  { %v63_v21 = vmul.f32 %v807_v18, %v44_v20  ;;  %v38_v22 = vpop.xlane.xlu0 %37  ;;  %v65_v35 = vmul.f32 %v807_v18, %v50_v19 }
  0x78   :  { %v61_v23 = vmul.f32 %v807_v18, %v38_v22 }
  0x79   :  { %v811_v24 = vsub.f32 %v29_v1, %v63_v21  ;;  %v838_v42 = vsub.f32 %v31_v0, %v65_v35 }
  0x7a   :  { %v814_v25 = vsub.f32 %v783_v2, %v61_v23 }
  0x7b   :  { %v75_v26 = vmul.f32 %v811_v24, %v811_v24  ;;  %v77_v47 = vmul.f32 %v838_v42, %v838_v42 }
  0x7c   :  { %v73_v27 = vmul.f32 %v814_v25, %v814_v25 }
  0x7d   :  { %v85_v28 = vsel %vm35_vm0, %v75_v26, 0.0  ;;  %v91_v48 = vsel %vm35_vm0, %v77_v47, 0.0 }
  0x7e   :  { %v53_v29 = vpop.xlane.xlu2 %52  ;;  %86 = vadd.xlane.f32.xlu2 %v85_v28  ;;  %v47_v30 = vpop.xlane.xlu1 %46  ;;  %v79_v31 = vsel %vm35_vm0, %v73_v27, 0.0 }
  0x7f   :  { %v66_v32 = vmul.f32 %v807_v18, %v53_v29  ;;  %v64_v33 = vmul.f32 %v807_v18, %v47_v30  ;;  %80 = vadd.xlane.f32.xlu0 %v79_v31  ;;  %v41_v34 = vpop.xlane.xlu0 %40  ;;  %v700_v30 = vld [vmem:[%s1088_s1] ss:$0 sm:$0xff] }
  0x80   :  { %v62_v36 = vmul.f32 %v807_v18, %v41_v34 }
  0x81   :  { %v826_v37 = vsub.f32 %v32_v6, %v66_v32  ;;  %v829_v38 = vsub.f32 %v795_v7, %v64_v33 }
  0x82   :  { %v832_v39 = vsub.f32 %v800_v8, %v62_v36 }
  0x83   :  { %v78_v40 = vmul.f32 %v826_v37, %v826_v37  ;;  %v76_v41 = vmul.f32 %v829_v38, %v829_v38 }
  0x84   :  { %v74_v43 = vmul.f32 %v832_v39, %v832_v39 }
  0x85   :  { %v94_v44 = vsel %vm35_vm0, %v78_v40, 0.0  ;;  %v88_v45 = vsel %vm35_vm0, %v76_v41, 0.0  ;;  %v701_v41 = vld [vmem:[%s1089_s2] ss:$0 sm:$0xff] }
  0x86   :  { %95 = vadd.xlane.f32.xlu2 %v94_v44  ;;  %v82_v46 = vsel %vm35_vm0, %v74_v43, 0.0 }
  0x87   :  { %89 = vadd.xlane.f32.xlu0 %v88_v45  ;;  %83 = vadd.xlane.f32.xlu1 %v82_v46 }
  0x8f   :  { %92 = vadd.xlane.f32.xlu1 %v91_v48 }
  0xf1   :  { %v87_v50 = vpop.xlane.xlu2 %86 }
  0xf2   :  { %v81_v51 = vpop.xlane.xlu0 %80  ;;  %v99_v53 = vmul.f32 %v87_v50, %v807_v18 }
  0xf3   :  { %v97_v52 = vmul.f32 %v81_v51, %v807_v18 }
  0xf4   :  { %v856_v56 = vadd.f32 1e-05, %v99_v53 }
  0xf5   :  { %v103_v54 = vadd.f32 1e-05, %v97_v52 }
  0xf6   :  { %vm135_vm10 = vweird.f32 %v856_v56 }
  0xf7   :  { %706 = vrsqrt.f32 %v103_v54  ;;  %vm115_vm3 = vweird.f32 %v103_v54 }
  0xf8   :  { %708 = vrsqrt.f32 %v856_v56 }
  0xf9   :  { %v96_v4 = vpop.xlane.xlu2 %95 }
  0xfa   :  { %v84_v57 = vpop.xlane.xlu1 %83  ;;  %v90_v58 = vpop.xlane.xlu0 %89  ;;  %v102_v12 = vmul.f32 %v96_v4, %v807_v18 }
  0xfb   :  { %v98_v59 = vmul.f32 %v84_v57, %v807_v18  ;;  %v100_v60 = vmul.f32 %v90_v58, %v807_v18 }
  0xfc   :  { %v108_v21 = vadd.f32 1e-05, %v102_v12 }
  0xfd   :  { %v707_v61 = vpop.eup %706  ;;  %v104_v62 = vadd.f32 1e-05, %v98_v59  ;;  %v106_v63 = vadd.f32 1e-05, %v100_v60 }
  0xfe   :  { %v110_v0 = vmul.f32 %v707_v61, %v103_v54  ;;  %v709_v6 = vpop.eup %708  ;;  %vm116_vm2 = vweird.f32 %v707_v61  ;;  %vm165_vm1 = vweird.f32 %v108_v21 }
  0xff   :  { %710 = vrsqrt.f32 %v104_v62  ;;  %v130_v14 = vmul.f32 %v709_v6, %v856_v56  ;;  %vm117_vm4 = vmor %vm115_vm3, %vm116_vm2  ;;  %vm125_vm6 = vweird.f32 %v104_v62  ;;  %vm145_vm8 = vweird.f32 %v106_v63 }
 0x100   :  { %v111_v1 = vmul.f32 %v707_v61, %v110_v0  ;;  %712 = vrsqrt.f32 %v106_v63  ;;  %vm136_vm11 = vweird.f32 %v709_v6 }
 0x101   :  { %v131_v23 = vmul.f32 %v709_v6, %v130_v14  ;;  %vm137_vm13 = vmor %vm135_vm10, %vm136_vm11  ;;  %v883_v14 = vld [vmem:[%s1090_s4] ss:$0 sm:$0xff] }
 0x102   :  { %v112_v3 = vmul.f32 0.5, %v111_v1  ;;  %v93_v5 = vpop.xlane.xlu1 %92 }
 0x103   :  { %v101_v9 = vmul.f32 %v93_v5, %v807_v18  ;;  %v132_v31 = vmul.f32 0.5, %v131_v23 }
 0x104   :  { %v113_v10 = vsub.f32 1.5, %v112_v3 }
 0x105   :  { %v711_v11 = vpop.eup %710  ;;  %v107_v19 = vadd.f32 1e-05, %v101_v9 }
 0x106   :  { %v713_v13 = vpop.eup %712  ;;  %v114_v15 = vmul.f32 %v707_v61, %v113_v10  ;;  %v120_v16 = vmul.f32 %v711_v11, %v104_v62  ;;  %vm126_vm5 = vweird.f32 %v711_v11 }
 0x107   :  { %v140_v17 = vmul.f32 %v713_v13, %v106_v63  ;;  %714 = vrsqrt.f32 %v107_v19  ;;  %vm127_vm7 = vmor %vm125_vm6, %vm126_vm5  ;;  %vm146_vm9 = vweird.f32 %v713_v13  ;;  %vm155_vm14 = vweird.f32 %v107_v19 }
 0x108   :  { %v121_v20 = vmul.f32 %v711_v11, %v120_v16  ;;  %v118_v26 = vsel %vm117_vm4, %v707_v61, %v114_v15  ;;  %716 = vrsqrt.f32 %v108_v21  ;;  %vm147_vm12 = vmor %vm145_vm8, %vm146_vm9  ;;  %v682_v16 = vld [vmem:[%s1093_s5 + $0x38] sm:$0xff] }
 0x109   :  { %v141_v22 = vmul.f32 %v713_v13, %v140_v17  ;;  %v169_v29 = vmul.f32 %v118_v26, %v814_v25  ;;  %v133_v25 = vsub.f32 1.5, %v132_v31  ;;  %584 = vmatpush.bf16.msra.mxu1 %v682_v16  ;;  %683 = vmatpush.bf16.msra.mxu2 %v682_v16  ;;  %v681_v17 = vld [vmem:[%s1093_s5 + $0x30] sm:$0xff] }
 0x10a   :  { %v122_v27 = vmul.f32 0.5, %v121_v20  ;;  %684 = vmatpush.bf16.msra.mxu3 %v682_v16 }
 0x10b   :  { %v142_v18 = vmul.f32 0.5, %v141_v22  ;;  %v178_v40 = vmul.f32 %v700_v30, %v169_v29  ;;  %v134_v49 = vmul.f32 %v709_v6, %v133_v25  ;;  %v680_v22 = vld [vmem:[%s1093_s5 + $0x28] sm:$0xff]  ;;  %v679_v29 = vld [vmem:[%s1093_s5 + $0x20] sm:$0xff] }
 0x10c   :  { %v123_v28 = vsub.f32 1.5, %v122_v27 }
 0x10d   :  { %v143_v34 = vsub.f32 1.5, %v142_v18  ;;  %v715_v35 = vpop.eup %714  ;;  %v187_v47 = vadd.f32 %v701_v41, %v178_v40  ;;  %v138_v53 = vsel %vm137_vm13, %v709_v6, %v134_v49  ;;  %585 = vmatpush.bf16.msra.mxu1 %v681_v17  ;;  %685 = vmatpush.bf16.msra.mxu2 %v681_v17 }
 0x10e   :  { %v124_v32 = vmul.f32 %v711_v11, %v123_v28  ;;  %v717_v43 = vpop.eup %716  ;;  %v150_v46 = vmul.f32 %v715_v35, %v107_v19  ;;  %v171_v56 = vmul.f32 %v138_v53, %v811_v24  ;;  %vm156_vm15 = vweird.f32 %v715_v35  ;;  %686 = vmatpush.bf16.msra.mxu3 %v681_v17 }
 0x10f   :  { %v144_v45 = vmul.f32 %v713_v13, %v143_v34  ;;  %vm166_vm2 = vweird.f32 %v717_v43  ;;  %vm157_vm3 = vmor %vm155_vm14, %vm156_vm15 }
 0x110   :  { %v128_v33 = vsel %vm127_vm7, %v711_v11, %v124_v32  ;;  %v151_v52 = vmul.f32 %v715_v35, %v150_v46  ;;  %v180_v61 = vmul.f32 %v700_v30, %v171_v56  ;;  %vm167_vm4 = vmor %vm165_vm1, %vm166_vm2 }
 0x111   :  { %v170_v36 = vmul.f32 %v128_v33, %v832_v39  ;;  %v160_v39 = vmul.f32 %v717_v43, %v108_v21  ;;  %v148_v51 = vsel %vm147_vm12, %v713_v13, %v144_v45  ;;  %586 = vmatpush.bf16.msra.mxu1 %v680_v22  ;;  %687 = vmatpush.bf16.msra.mxu2 %v680_v22 }
 0x112   :  { %v172_v55 = vmul.f32 %v148_v51, %v829_v38  ;;  %v152_v57 = vmul.f32 0.5, %v151_v52  ;;  %v189_v1 = vadd.f32 %v701_v41, %v180_v61  ;;  %688 = vmatpush.bf16.msra.mxu3 %v680_v22 }
 0x113   :  { %v179_v44 = vmul.f32 %v700_v30, %v170_v36  ;;  %v161_v54 = vmul.f32 %v717_v43, %v160_v39  ;;  %v678_v36 = vld [vmem:[%s1093_s5 + $0x18] sm:$0xff] }
 0x114   :  { %v181_v59 = vmul.f32 %v700_v30, %v172_v55  ;;  %v153_v60 = vsub.f32 1.5, %v152_v57 }
 0x115   :  { %v188_v48 = vadd.f32 %v701_v41, %v179_v44  ;;  %v162_v58 = vmul.f32 0.5, %v161_v54  ;;  %587 = vmatpush.bf16.msra.mxu1 %v679_v29  ;;  %689 = vmatpush.bf16.msra.mxu2 %v679_v29 }
 0x116   :  { %v190_v63 = vadd.f32 %v701_v41, %v181_v59  ;;  %v154_v0 = vmul.f32 %v715_v35, %v153_v60  ;;  %690 = vmatpush.bf16.msra.mxu3 %v679_v29 }
 0x117   :  { %v193_v50 = vpack.c.bf16 %v188_v48, %v187_v47  ;;  %v163_v62 = vsub.f32 1.5, %v162_v58  ;;  %v677_v48 = vld [vmem:[%s1093_s5 + $0x10] sm:$0xff]  ;;  %v676_v58 = vld [vmem:[%s1093_s5 + $0x8] sm:$0xff] }
 0x118   :  { %v194_v4 = vpack.c.bf16 %v190_v63, %v189_v1  ;;  %v158_v38 = vsel %vm157_vm3, %v715_v35, %v154_v0 }
 0x119   :  { %632 = vmatmul.msk.bf16.vlgmr.msra.gmra.mxu0 %vm35_vm0, %v193_v50  ;;  %v164_v3 = vmul.f32 %v717_v43, %v163_v62  ;;  %v173_v5 = vmul.f32 %v158_v38, %v838_v42  ;;  %588 = vmatpush.bf16.msra.mxu1 %v678_v36  ;;  %v675_v38 = vld [vmem:[%s1093_s5] sm:$0xff] }
 0x11a   :  { %691 = vmatpush.bf16.msra.mxu2 %v678_v36  ;;  %692 = vmatpush.bf16.msra.mxu3 %v678_v36 }
 0x11b   :  { %v168_v24 = vsel %vm167_vm4, %v717_v43, %v164_v3  ;;  %v182_v9 = vmul.f32 %v700_v30, %v173_v5 }
 0x11c   :  { %v174_v6 = vmul.f32 %v168_v24, %v826_v37 }
 0x11d   :  { %v191_v11 = vadd.f32 %v701_v41, %v182_v9  ;;  %589 = vmatpush.bf16.msra.mxu1 %v677_v48 }
 0x11e   :  { %v183_v10 = vmul.f32 %v700_v30, %v174_v6  ;;  %693 = vmatpush.bf16.msra.mxu2 %v677_v48  ;;  %694 = vmatpush.bf16.msra.mxu3 %v677_v48 }
 0x120   :  { %v192_v12 = vadd.f32 %v701_v41, %v183_v10 }
 0x121   :  { %590 = vmatpush.bf16.msra.mxu1 %v676_v58 }
 0x122   :  { %v195_v13 = vpack.c.bf16 %v192_v12, %v191_v11  ;;  %695 = vmatpush.bf16.msra.mxu2 %v676_v58  ;;  %696 = vmatpush.bf16.msra.mxu3 %v676_v58 }
 0x125   :  { %591 = vmatpush.bf16.msra.mxu1 %v675_v38 }
 0x126   :  { %697 = vmatpush.bf16.msra.mxu2 %v675_v38  ;;  %698 = vmatpush.bf16.msra.mxu3 %v675_v38 }
 0x129   :  { %633 = vmatmul.msk.bf16.gmra.mxu0 %vm35_vm0, %v194_v4 }
 0x139   :  { %634 = vmatmul.msk.bf16.gmra.mxu0 %vm35_vm0, %v195_v13 }
 0x196   :  { %v234_v15 = vpop.f32.mrf.mxu0 }
 0x197   :  { %v889_v42 = vadd.f32 %v883_v14, %v234_v15 }
 0x199   :  { %v892_v37 = vmul.f32 0.70710677, %v889_v42 }
 0x19b   :  { %v261_v19 = vmul.f32 %v892_v37, %v892_v37 }
 0x19d   :  { %v899_v20 = vmin.f32 %v261_v19, 16.0 }
 0x19e   :  { %v236_v21 = vpop.f32.mrf.mxu0 }
 0x19f   :  { %v263_v23 = vmul.f32 2.1237322e-06, %v899_v20  ;;  %v906_v26 = vadd.f32 %v883_v14, %v236_v21  ;;  %v274_v27 = vmul.f32 3.8918573e-05, %v899_v20 }
 0x1a1   :  { %v264_v28 = vadd.f32 0.00028619796, %v263_v23  ;;  %v910_v18 = vmul.f32 0.70710677, %v906_v26  ;;  %v275_v30 = vadd.f32 0.001143296, %v274_v27 }
 0x1a3   :  { %v301_v31 = vmul.f32 %v910_v18, %v910_v18  ;;  %v276_v32 = vmul.f32 %v275_v30, %v899_v20  ;;  %v265_v33 = vmul.f32 %v264_v28, %v899_v20 }
 0x1a5   :  { %v919_v34 = vmin.f32 %v301_v31, 16.0  ;;  %v277_v40 = vadd.f32 0.014752088, %v276_v32  ;;  %v266_v45 = vadd.f32 0.0036580483, %v265_v33 }
 0x1a6   :  { %v239_v35 = vpop.f32.mrf.mxu0 }
 0x1a7   :  { %v303_v41 = vmul.f32 2.1237322e-06, %v919_v34  ;;  %v926_v25 = vadd.f32 %v883_v14, %v239_v35  ;;  %v314_v43 = vmul.f32 3.8918573e-05, %v919_v34  ;;  %v278_v44 = vmul.f32 %v277_v40, %v899_v20 }
 0x1a8   :  { %v267_v53 = vmul.f32 %v266_v45, %v899_v20 }
 0x1a9   :  { %v304_v46 = vadd.f32 0.00028619796, %v303_v41  ;;  %v931_v47 = vmul.f32 0.70710677, %v926_v25  ;;  %v279_v49 = vadd.f32 0.112945676, %v278_v44 }
 0x1aa   :  { %v315_v50 = vadd.f32 0.001143296, %v314_v43  ;;  %v268_v0 = vadd.f32 0.05243302, %v267_v53 }
 0x1ab   :  { %v305_v39 = vmul.f32 %v304_v46, %v919_v34  ;;  %v341_v51 = vmul.f32 %v931_v47, %v931_v47  ;;  %v280_v52 = vmul.f32 %v279_v49, %v899_v20 }
 0x1ac   :  { %v316_v54 = vmul.f32 %v315_v50, %v919_v34  ;;  %v269_v9 = vmul.f32 %v268_v0, %v899_v20 }
 0x1ad   :  { %v306_v55 = vadd.f32 0.0036580483, %v305_v39  ;;  %v942_v57 = vmin.f32 %v341_v51, 16.0  ;;  %v281_v59 = vadd.f32 0.4994258, %v280_v52 }
 0x1ae   :  { %v241_v56 = vpop.f32.mrf.mxu0  ;;  %v317_v61 = vadd.f32 0.014752088, %v316_v54  ;;  %v270_v22 = vadd.f32 0.18741608, %v269_v9 }
 0x1af   :  { %v948_v60 = vadd.f32 %v883_v14, %v241_v56  ;;  %v282_v62 = vmul.f32 %v281_v59, %v899_v20  ;;  %v354_v63 = vmul.f32 3.8918573e-05, %v942_v57  ;;  %v307_v3 = vmul.f32 %v306_v55, %v919_v34 }
 0x1b0   :  { %v318_v1 = vmul.f32 %v317_v61, %v919_v34  ;;  %v343_v10 = vmul.f32 2.1237322e-06, %v942_v57  ;;  %v271_v40 = vmul.f32 %v270_v22, %v899_v20 }
 0x1b1   :  { %v955_v4 = vmul.f32 0.70710677, %v948_v60  ;;  %v283_v24 = vadd.f32 1.0, %v282_v62  ;;  %v355_v6 = vadd.f32 0.001143296, %v354_v63 }
 0x1b2   :  { %v319_v5 = vadd.f32 0.112945676, %v318_v1  ;;  %v308_v12 = vadd.f32 0.05243302, %v307_v3  ;;  %v344_v23 = vadd.f32 0.00028619796, %v343_v10 }
 0x1b3   :  { %718 = vrcp.f32 %v283_v24  ;;  %v381_v13 = vmul.f32 %v955_v4, %v955_v4  ;;  %v356_v16 = vmul.f32 %v355_v6, %v942_v57  ;;  %v295_v48 = vand.u32 2147483648, %v283_v24 }
 0x1b4   :  { %v320_v11 = vmul.f32 %v319_v5, %v919_v34  ;;  %v309_v28 = vmul.f32 %v308_v12, %v919_v34  ;;  %v345_v41 = vmul.f32 %v344_v23, %v942_v57  ;;  %v293_v51 = vand.u32 2147483647, %v283_v24 }
 0x1b5   :  { %v357_v21 = vadd.f32 0.014752088, %v356_v16  ;;  %v970_v29 = vmin.f32 %v381_v13, 16.0  ;;  %v272_v53 = vadd.f32 1.1283791, %v271_v40  ;;  %vm289_vm6 = vweird.f32 %v283_v24 }
 0x1b6   :  { %v244_v15 = vpop.f32.mrf.mxu0  ;;  %v321_v19 = vadd.f32 0.4994258, %v320_v11  ;;  %v310_v44 = vadd.f32 0.18741608, %v309_v28  ;;  %v346_v58 = vadd.f32 0.0036580483, %v345_v41 }
 0x1b7   :  { %v967_v17 = vadd.f32 %v883_v14, %v244_v15  ;;  %v358_v31 = vmul.f32 %v357_v21, %v942_v57  ;;  %v383_v45 = vmul.f32 2.1237322e-06, %v970_v29  ;;  %v394_v52 = vmul.f32 3.8918573e-05, %v970_v29 }
 0x1b8   :  { %v322_v30 = vmul.f32 %v321_v19, %v919_v34  ;;  %v311_v56 = vmul.f32 %v310_v44, %v919_v34  ;;  %vm294_vm8 = vcmp.eq.f32.partialorder %v293_v51, 8.507059e+37  ;;  %v273_v38 = vmul.f32 %v272_v53, %v892_v37 }
 0x1b9   :  { %v719_v27 = vpop.eup %718  ;;  %v975_v32 = vmul.f32 0.70710677, %v967_v17  ;;  %v359_v36 = vadd.f32 0.112945676, %v358_v31  ;;  %v384_v59 = vadd.f32 0.00028619796, %v383_v45  ;;  %v347_v9 = vmul.f32 %v346_v58, %v942_v57 }
 0x1ba   :  { %v285_v33 = vmul.f32 %v719_v27, %v283_v24  ;;  %v323_v35 = vadd.f32 1.0, %v322_v30  ;;  %vm290_vm5 = vweird.f32 %v719_v27  ;;  %v395_v3 = vadd.f32 0.001143296, %v394_v52 }
 0x1bb   :  { %v421_v49 = vmul.f32 %v975_v32, %v975_v32  ;;  %v360_v20 = vmul.f32 %v359_v36, %v942_v57  ;;  %vm291_vm7 = vmor %vm289_vm6, %vm290_vm5  ;;  %v312_v6 = vadd.f32 1.1283791, %v311_v56  ;;  %v385_v12 = vmul.f32 %v384_v59, %v970_v29 }
 0x1bc   :  { %v286_v43 = vsub.f32 1.0, %v285_v33  ;;  %720 = vrcp.f32 %v323_v35  ;;  %v396_v11 = vmul.f32 %v395_v3, %v970_v29  ;;  %v333_v16 = vand.u32 2147483647, %v323_v35 }
 0x1bd   :  { %v991_v61 = vmin.f32 %v421_v49, 16.0  ;;  %v361_v0 = vadd.f32 0.4994258, %v360_v20  ;;  %v335_v21 = vand.u32 2147483648, %v323_v35  ;;  %v348_v30 = vadd.f32 0.05243302, %v347_v9 }
 0x1be   :  { %v246_v46 = vpop.f32.mrf.mxu0  ;;  %v287_v50 = vmul.f32 %v719_v27, %v286_v43  ;;  %v397_v22 = vadd.f32 0.014752088, %v396_v11  ;;  %v313_v31 = vmul.f32 %v312_v6, %v910_v18  ;;  %v386_v33 = vadd.f32 0.0036580483, %v385_v12 }
 0x1bf   :  { %v983_v39 = vadd.f32 %v883_v14, %v246_v46  ;;  %v296_v14 = vor.u32 1.1754944e-38, %v295_v48  ;;  %v362_v10 = vmul.f32 %v361_v0, %v942_v57  ;;  %v423_v13 = vmul.f32 2.1237322e-06, %v991_v61 }
 0x1c0   :  { %v288_v55 = vadd.f32 %v719_v27, %v287_v50  ;;  %v434_v28 = vmul.f32 3.8918573e-05, %v991_v61  ;;  %vm329_vm10 = vweird.f32 %v323_v35  ;;  %vm334_vm12 = vcmp.eq.f32.partialorder %v333_v16, 8.507059e+37 }
 0x1c1   :  { %v988_v54 = vmul.f32 0.70710677, %v983_v39  ;;  %v1003_v37 = vadd.f32 1.0, %v362_v10  ;;  %v424_v40 = vadd.f32 0.00028619796, %v423_v13  ;;  %v336_v41 = vor.u32 1.1754944e-38, %v335_v21 }
 0x1c2   :  { %v292_v63 = vsel %vm291_vm7, %v719_v27, %v288_v55  ;;  %v721_v1 = vpop.eup %720  ;;  %v398_v43 = vmul.f32 %v397_v22, %v970_v29  ;;  %v435_v48 = vadd.f32 0.001143296, %v434_v28  ;;  %v349_v49 = vmul.f32 %v348_v30, %v942_v57 }
 0x1c3   :  { %v461_v62 = vmul.f32 %v988_v54, %v988_v54  ;;  %v297_v24 = vsel %vm294_vm8, %v296_v14, %v292_v63  ;;  %v325_v34 = vmul.f32 %v721_v1, %v323_v35  ;;  %vm330_vm9 = vweird.f32 %v721_v1 }
 0x1c4   :  { %v298_v19 = vmul.f32 %v297_v24, %v273_v38  ;;  %722 = vrcp.f32 %v1003_v37  ;;  %vm331_vm11 = vmor %vm329_vm10, %vm330_vm9  ;;  %v399_v51 = vadd.f32 0.112945676, %v398_v43  ;;  %v387_v18 = vmul.f32 %v386_v33, %v970_v29 }
 0x1c5   :  { %v996_v5 = vmin.f32 %v461_v62, 16.0  ;;  %v326_v15 = vsub.f32 1.0, %v325_v34  ;;  %v436_v35 = vmul.f32 %v435_v48, %v991_v61  ;;  %v249_v55 = vmul.f32 0.5, %v889_v42 }
 0x1c6   :  { %v635_v45 = vclamps-f32 %v298_v19, 1.0  ;;  %v425_v56 = vmul.f32 %v424_v40, %v991_v61  ;;  %v400_v58 = vmul.f32 %v399_v51, %v970_v29  ;;  %v250_v34 = vmul.f32 0.5, %v906_v26 }
 0x1c7   :  { %v463_v23 = vmul.f32 2.1237322e-06, %v996_v5  ;;  %v327_v27 = vmul.f32 %v721_v1, %v326_v15  ;;  %v474_v20 = vmul.f32 3.8918573e-05, %v996_v5  ;;  %v437_v38 = vadd.f32 0.014752088, %v436_v35 }
 0x1c8   :  { %v501_v63 = vadd.f32 1.0, %v635_v45  ;;  %v401_v3 = vadd.f32 0.4994258, %v400_v58  ;;  %v388_v6 = vadd.f32 0.05243302, %v387_v18  ;;  %vm369_vm14 = vweird.f32 %v1003_v37 }
 0x1c9   :  { %v328_v36 = vadd.f32 %v721_v1, %v327_v27  ;;  %v464_v44 = vadd.f32 0.00028619796, %v463_v23  ;;  %v475_v59 = vadd.f32 0.001143296, %v474_v20  ;;  %v426_v10 = vadd.f32 0.0036580483, %v425_v56 }
 0x1ca   :  { %v723_v53 = vpop.eup %722  ;;  %v402_v11 = vmul.f32 %v401_v3, %v970_v29  ;;  %v438_v12 = vmul.f32 %v437_v38, %v991_v61  ;;  %v507_v16 = vmul.f32 %v501_v63, %v249_v55  ;;  %v389_v26 = vmul.f32 %v388_v6, %v970_v29 }
 0x1cb   :  { %v332_v46 = vsel %vm331_vm11, %v721_v1, %v328_v36  ;;  %v465_v14 = vmul.f32 %v464_v44, %v996_v5  ;;  %v365_v0 = vmul.f32 %v723_v53, %v1003_v37  ;;  %v350_v1 = vadd.f32 0.18741608, %v349_v49 }
 0x1cc   :  { %v337_v50 = vsel %vm334_vm12, %v336_v41, %v332_v46  ;;  %v476_v24 = vmul.f32 %v475_v59, %v996_v5  ;;  %v403_v23 = vadd.f32 1.0, %v402_v11  ;;  %v439_v27 = vadd.f32 0.112945676, %v438_v12 }
 0x1cd   :  { %v338_v52 = vmul.f32 %v337_v50, %v313_v31  ;;  %v366_v9 = vsub.f32 1.0, %v365_v0  ;;  %v466_v15 = vadd.f32 0.0036580483, %v465_v14  ;;  %v351_v22 = vmul.f32 %v350_v1, %v942_v57 }
 0x1ce   :  { %v477_v13 = vadd.f32 0.014752088, %v476_v24  ;;  %vm370_vm13 = vweird.f32 %v723_v53  ;;  %v427_v33 = vmul.f32 %v426_v10, %v991_v61  ;;  %v375_v36 = vand.u32 2147483648, %v1003_v37 }
 0x1cf   :  { %v636_v62 = vclamps-f32 %v338_v52, 1.0  ;;  %v367_v21 = vmul.f32 %v723_v53, %v366_v9  ;;  %724 = vrcp.f32 %v403_v23  ;;  %v467_v40 = vmul.f32 %v466_v15, %v996_v5  ;;  %vm371_vm15 = vmor %vm369_vm14, %vm370_vm13 }
 0x1d0   :  { %v478_v28 = vmul.f32 %v477_v13, %v996_v5  ;;  %v373_v57 = vand.u32 2147483647, %v1003_v37  ;;  %v440_v41 = vmul.f32 %v439_v27, %v991_v61  ;;  %v352_v44 = vadd.f32 1.1283791, %v351_v22 }
 0x1d1   :  { %v502_v42 = vadd.f32 1.0, %v636_v62  ;;  %v368_v31 = vadd.f32 %v723_v53, %v367_v21  ;;  %v390_v45 = vadd.f32 0.18741608, %v389_v26  ;;  %v428_v50 = vadd.f32 0.05243302, %v427_v33 }
 0x1d2   :  { %v479_v43 = vadd.f32 0.112945676, %v478_v28  ;;  %v441_v48 = vadd.f32 0.4994258, %v440_v41  ;;  %v376_v51 = vor.u32 1.1754944e-38, %v375_v36  ;;  %vm374_vm1 = vcmp.eq.f32.partialorder %v373_v57, 8.507059e+37 }
 0x1d3   :  { %v508_v19 = vmul.f32 %v502_v42, %v250_v34  ;;  %v372_v46 = vsel %vm371_vm15, %v723_v53, %v368_v31  ;;  %v468_v20 = vadd.f32 0.05243302, %v467_v40  ;;  %v353_v37 = vmul.f32 %v352_v44, %v931_v47 }
 0x1d4   :  { %v480_v49 = vmul.f32 %v479_v43, %v996_v5  ;;  %v442_v18 = vmul.f32 %v441_v48, %v991_v61  ;;  %v377_v55 = vsel %vm374_vm1, %v376_v51, %v372_v46  ;;  %v391_v56 = vmul.f32 %v390_v45, %v970_v29 }
 0x1d5   :  { %v513_v30 = vpack.c.bf16 %v508_v19, %v507_v16  ;;  %v725_v35 = vpop.eup %724  ;;  %v429_v53 = vmul.f32 %v428_v50, %v991_v61  ;;  %v469_v62 = vmul.f32 %v468_v20, %v996_v5  ;;  %v378_v63 = vmul.f32 %v377_v55, %v353_v37 }
 0x1d6   :  { %v481_v52 = vadd.f32 0.4994258, %v480_v49  ;;  %v405_v58 = vmul.f32 %v725_v35, %v403_v23  ;;  %v443_v59 = vadd.f32 1.0, %v442_v18  ;;  %v415_v1 = vand.u32 2147483648, %v403_v23 }
 0x1d7   :  { %592 = vmatmul.bf16.vlgmr.msra.gmra.mxu1 %v513_v30  ;;  %v392_v38 = vadd.f32 1.1283791, %v391_v56  ;;  %vm410_vm2 = vweird.f32 %v725_v35  ;;  %v413_v34 = vand.u32 2147483647, %v403_v23  ;;  %v430_v47 = vadd.f32 0.18741608, %v429_v53 }
 0x1d8   :  { %v482_v14 = vmul.f32 %v481_v52, %v996_v5  ;;  %v406_v0 = vsub.f32 1.0, %v405_v58  ;;  %726 = vrcp.f32 %v443_v59  ;;  %v470_v29 = vadd.f32 0.18741608, %v469_v62 }
 0x1d9   :  { %v637_v6 = vclamps-f32 %v378_v63, 1.0  ;;  %vm409_vm3 = vweird.f32 %v403_v23  ;;  %v416_v9 = vor.u32 1.1754944e-38, %v415_v1  ;;  %v393_v11 = vmul.f32 %v392_v38, %v955_v4 }
 0x1da   :  { %v483_v3 = vadd.f32 1.0, %v482_v14  ;;  %v407_v24 = vmul.f32 %v725_v35, %v406_v0  ;;  %vm411_vm4 = vmor %vm409_vm3, %vm410_vm2  ;;  %vm414_vm5 = vcmp.eq.f32.partialorder %v413_v34, 8.507059e+37  ;;  %v431_v13 = vmul.f32 %v430_v47, %v991_v61 }
 0x1db   :  { %v471_v19 = vmul.f32 %v470_v29, %v996_v5  ;;  %v503_v22 = vadd.f32 1.0, %v637_v6  ;;  %v455_v26 = vand.u32 2147483648, %v443_v59  ;;  %v251_v23 = vmul.f32 0.5, %v926_v25 }
 0x1dc   :  { %728 = vrcp.f32 %v483_v3  ;;  %v408_v42 = vadd.f32 %v725_v35, %v407_v24  ;;  %v252_v30 = vmul.f32 0.5, %v948_v60  ;;  %v432_v4 = vadd.f32 1.1283791, %v431_v13 }
 0x1dd   :  { %v453_v40 = vand.u32 2147483647, %v443_v59  ;;  %v472_v61 = vadd.f32 1.1283791, %v471_v19  ;;  %v509_v41 = vmul.f32 %v503_v22, %v251_v23  ;;  %vm449_vm7 = vweird.f32 %v443_v59 }
 0x1de   :  { %v727_v10 = vpop.eup %726  ;;  %v412_v12 = vsel %vm411_vm4, %v725_v35, %v408_v42  ;;  %v456_v44 = vor.u32 1.1754944e-38, %v455_v26  ;;  %v495_v45 = vand.u32 2147483648, %v483_v3  ;;  %v493_v25 = vand.u32 2147483647, %v483_v3 }
 0x1df   :  { %v417_v15 = vsel %vm414_vm5, %v416_v9, %v412_v12  ;;  %v445_v16 = vmul.f32 %v727_v10, %v443_v59  ;;  %vm450_vm6 = vweird.f32 %v727_v10  ;;  %v433_v60 = vmul.f32 %v432_v4, %v975_v32  ;;  %v731_v12 = vld [vmem:[%s1087_s0 + $0x20] sm:$0xff] }
 0x1e0   :  { %v418_v21 = vmul.f32 %v417_v15, %v393_v11  ;;  %vm451_vm8 = vmor %vm449_vm7, %vm450_vm6  ;;  %vm454_vm10 = vcmp.eq.f32.partialorder %v453_v40, 8.507059e+37  ;;  %vm489_vm11 = vweird.f32 %v483_v3  ;;  %v496_v52 = vor.u32 1.1754944e-38, %v495_v45 }
 0x1e1   :  { %v446_v28 = vsub.f32 1.0, %v445_v16  ;;  %v473_v35 = vmul.f32 %v472_v61, %v988_v54  ;;  %vm494_vm13 = vcmp.eq.f32.partialorder %v493_v25, 8.507059e+37  ;;  %v253_v32 = vmul.f32 0.5, %v967_v17  ;;  %v703_v54 = vld [vmem:[%s1092_s6] ss:$0 sm:$0xff] }
 0x1e2   :  { %v729_v27 = vpop.eup %728  ;;  %v638_v31 = vclamps-f32 %v418_v21, 1.0  ;;  %v254_v14 = vmul.f32 0.5, %v983_v39 }
 0x1e3   :  { %v485_v33 = vmul.f32 %v729_v27, %v483_v3  ;;  %v447_v36 = vmul.f32 %v727_v10, %v446_v28  ;;  %vm490_vm9 = vweird.f32 %v729_v27 }
 0x1e4   :  { %v504_v57 = vadd.f32 1.0, %v638_v31  ;;  %vm491_vm12 = vmor %vm489_vm11, %vm490_vm9 }
 0x1e5   :  { %v486_v43 = vsub.f32 1.0, %v485_v33  ;;  %v448_v5 = vadd.f32 %v727_v10, %v447_v36 }
 0x1e6   :  { %v510_v46 = vmul.f32 %v504_v57, %v252_v30 }
 0x1e7   :  { %v487_v48 = vmul.f32 %v729_v27, %v486_v43  ;;  %v452_v49 = vsel %vm451_vm8, %v727_v10, %v448_v5 }
 0x1e8   :  { %v514_v50 = vpack.c.bf16 %v510_v46, %v509_v41  ;;  %v457_v51 = vsel %vm454_vm10, %v456_v44, %v452_v49 }
 0x1e9   :  { %v488_v20 = vadd.f32 %v729_v27, %v487_v48  ;;  %v458_v18 = vmul.f32 %v457_v51, %v433_v60 }
 0x1ea   :  { %597 = vmatmul.bf16.vlgmr.msra.gmra.mxu2 %v514_v50 }
 0x1eb   :  { %v492_v55 = vsel %vm491_vm12, %v729_v27, %v488_v20  ;;  %v639_v37 = vclamps-f32 %v458_v18, 1.0 }
 0x1ec   :  { %v497_v56 = vsel %vm494_vm13, %v496_v52, %v492_v55 }
 0x1ed   :  { %v498_v58 = vmul.f32 %v497_v56, %v473_v35  ;;  %v505_v53 = vadd.f32 1.0, %v639_v37 }
 0x1ef   :  { %v640_v59 = vclamps-f32 %v498_v58, 1.0  ;;  %v511_v63 = vmul.f32 %v505_v53, %v253_v32 }
 0x1f1   :  { %v506_v62 = vadd.f32 1.0, %v640_v59 }
 0x1f3   :  { %v512_v0 = vmul.f32 %v506_v62, %v254_v14 }
 0x1f5   :  { %v515_v1 = vpack.c.bf16 %v512_v0, %v511_v63 }
 0x1f7   :  { %602 = vmatmul.bf16.vlgmr.msra.gmra.mxu3 %v515_v1 }
 0x254   :  { %v593_v3 = vpop.f32.mrf.mxu1 }
 0x255   :  { %v594_v38 = vadd.f32 %v703_v54, %v593_v3 }
 0x257   :  { %v608_v24 = vadd.f32 %v594_v38, %v783_v2  ;;  %v730_v2 = vld [vmem:[%s1087_s0 + $0x10] sm:$0xff] }
 0x259   :  { %614 = vst.msk [vmem:[%s1094_s7] sm:$0xff] %vm35_vm0, %v608_v24 }
 0x25c   :  { %v595_v17 = vpop.f32.mrf.mxu1 }
 0x25d   :  { %v596_v39 = vadd.f32 %v703_v54, %v595_v17 }
 0x25f   :  { %v609_v34 = vadd.f32 %v596_v39, %v800_v8 }
 0x261   :  { %615 = vst.msk [vmem:[%s1094_s7 + $0x8] sm:$0xff] %vm35_vm0, %v609_v34 }
 0x26d   :  { %v598_v47 = vpop.f32.mrf.mxu2 }
 0x26e   :  { %v599_v29 = vadd.f32 %v703_v54, %v598_v47 }
 0x270   :  { %v610_v6 = vadd.f32 %v730_v2, %v599_v29 }
 0x272   :  { %616 = vst.msk [vmem:[%s1094_s7 + $0x10] sm:$0xff] %vm35_vm0, %v610_v6 }
 0x275   :  { %v600_v42 = vpop.f32.mrf.mxu2 }
 0x276   :  { %v601_v9 = vadd.f32 %v703_v54, %v600_v42 }
 0x278   :  { %v611_v8 = vadd.f32 %v601_v9, %v795_v7  ;;  %v732_v7 = vld [vmem:[%s1087_s0 + $0x28] sm:$0xff] }
 0x27a   :  { %v603_v10 = vpop.f32.mrf.mxu3  ;;  %617 = vst.msk [vmem:[%s1094_s7 + $0x18] sm:$0xff] %vm35_vm0, %v611_v8 }
 0x27b   :  { %v604_v11 = vadd.f32 %v703_v54, %v603_v10 }
 0x27d   :  { %v612_v13 = vadd.f32 %v731_v12, %v604_v11 }
 0x27f   :  { %618 = vst.msk [vmem:[%s1094_s7 + $0x20] sm:$0xff] %vm35_vm0, %v612_v13 }
 0x282   :  { %v605_v15 = vpop.f32.mrf.mxu3 }
 0x283   :  { %v606_v16 = vadd.f32 %v703_v54, %v605_v15 }
 0x285   :  { %v613_v19 = vadd.f32 %v732_v7, %v606_v16 }
 0x287   :  { %619 = vst.msk [vmem:[%s1094_s7 + $0x28] sm:$0xff] %vm35_vm0, %v613_v19 }

// kernel: vit_predictor_forward.11
= control target key start
LH: loop header
LB: loop body
LE: loop exit
PB: predicated region body
PF: predicated region fallthrough
CT: control target
= control target key end

     0   :  { %vm26_vm0 = vcmask 261120   ;;  %s260_s0 = inlined_call_operand.vmem [shape: f32[16,32], index: 0, kind: input, shape index: {}]   ;;  %s261_s1 = inlined_call_operand.vmem [shape: f32[1,32], index: 1, kind: input, shape index: {}]   ;;  %s262_s2 = inlined_call_operand.vmem [shape: f32[1,32], index: 2, kind: input, shape index: {}]   ;;  %s263_s3 = inlined_call_operand.vmem [shape: bf16[32,48], index: 3, kind: input, shape index: {}]   ;;  %s264_s4 = inlined_call_operand.vmem [shape: f32[1,48], index: 4, kind: input, shape index: {}]   ;;  %s265_s5 = inlined_call_operand.hbm [shape: f32[16,48], index: 5, kind: output, shape index: {}]  }
   0x1   :  { %v22_v0 = vld [vmem:[%s260_s0] sm:$0xff] }
   0x2   :  { %v27_v1 = vsel %vm26_vm0, %v22_v0, 0.0 }
   0x3   :  { %28 = vadd.xlane.f32.xlu0 %v27_v1 }
   0x4   :  { %10 = vsyncpa [#allocation3], 0  ;;  %v23_v2 = vld [vmem:[%s260_s0 + $0x8] sm:$0xff]  ;;  %v197_v4 = vmov 32.0   ;;  %v156_v23 = vld [vmem:[%s263_s3] sm:$0xff]  ;;  %vm126_vm8 = vcmask 392192  }
   0x5   :  { %v30_v3 = vsel %vm26_vm0, %v23_v2, 0.0  ;;  %165 = vrcp.f32 %v197_v4  ;;  %v157_v21 = vld [vmem:[%s263_s3 + $0x8] sm:$0xff]  ;;  %v162_v42 = vld [vmem:[%s261_s1] ss:$0 sm:$0xff]  ;;  %s198_s1 = smov [#allocation2]   ;;  %s199_s8 = smov 128  }
   0x6   :  { %118 = vmatpush.bf16.msra.mxu0 %v157_v21  ;;  %v163_v47 = vld [vmem:[%s262_s2] ss:$0 sm:$0xff]  ;;  %s133_s30 = sshll.u32 %s198_s1, 4  ;;  %s135_s2 = sshll.u32 %s265_s5, 4  ;;  %s134_s30 = int_to_ptr.vmem [resolvable:$true] %s133_s30  ;;  %s136_s2 = int_to_ptr.hbm [resolvable:$true] %s135_s2 }
   0x7   :  { %v164_v52 = vld [vmem:[%s264_s4] ss:$0 sm:$0xff]  ;;  %s200_s9 = smov 8  }
   0xa   :  { %119 = vmatpush.bf16.msra.mxu0 %v156_v23 }
   0xb   :  { %31 = vadd.xlane.f32.xlu0 %v30_v3  ;;  %v166_v5 = vpop.eup %165 }
   0xc   :  { %v34_v6 = vmul.f32 32.0, %v166_v5  ;;  %vm38_vm1 = vweird.f32 %v166_v5 }
   0xe   :  { %v35_v7 = vsub.f32 1.0, %v34_v6 }
  0x10   :  { %v36_v8 = vmul.f32 %v166_v5, %v35_v7 }
  0x12   :  { %v37_v9 = vadd.f32 %v166_v5, %v36_v8 }
  0x14   :  { %v39_v10 = vsel %vm38_vm1, %v166_v5, %v37_v9 }
  0x76   :  { %v29_v11 = vpop.xlane.xlu0 %28 }
  0x77   :  { %v40_v12 = vmul.f32 %v39_v10, %v29_v11 }
  0x79   :  { %v42_v13 = vsub.f32 %v22_v0, %v40_v12 }
  0x7b   :  { %v44_v14 = vmul.f32 %v42_v13, %v42_v13 }
  0x7d   :  { %v46_v15 = vsel %vm26_vm0, %v44_v14, 0.0 }
  0x7e   :  { %47 = vadd.xlane.f32.xlu1 %v46_v15  ;;  %v32_v16 = vpop.xlane.xlu0 %31 }
  0x7f   :  { %v41_v17 = vmul.f32 %v39_v10, %v32_v16 }
  0x81   :  { %v43_v18 = vsub.f32 %v23_v2, %v41_v17 }
  0x83   :  { %v45_v19 = vmul.f32 %v43_v18, %v43_v18 }
  0x85   :  { %v49_v20 = vsel %vm26_vm0, %v45_v19, 0.0 }
  0x86   :  { %50 = vadd.xlane.f32.xlu1 %v49_v20 }
  0xf1   :  { %v48_v22 = vpop.xlane.xlu1 %47 }
  0xf2   :  { %v52_v24 = vmul.f32 %v48_v22, %v39_v10 }
  0xf4   :  { %v54_v25 = vadd.f32 1e-05, %v52_v24 }
  0xf6   :  { %167 = vrsqrt.f32 %v54_v25  ;;  %vm62_vm3 = vweird.f32 %v54_v25 }
  0xf9   :  { %v51_v26 = vpop.xlane.xlu1 %50 }
  0xfa   :  { %v53_v27 = vmul.f32 %v51_v26, %v39_v10 }
  0xfc   :  { %v168_v28 = vpop.eup %167  ;;  %v55_v29 = vadd.f32 1e-05, %v53_v27 }
  0xfd   :  { %v57_v30 = vmul.f32 %v168_v28, %v54_v25  ;;  %vm63_vm2 = vweird.f32 %v168_v28 }
  0xfe   :  { %169 = vrsqrt.f32 %v55_v29  ;;  %vm64_vm4 = vmor %vm62_vm3, %vm63_vm2  ;;  %vm72_vm6 = vweird.f32 %v55_v29 }
  0xff   :  { %v58_v31 = vmul.f32 %v168_v28, %v57_v30 }
 0x101   :  { %v59_v32 = vmul.f32 0.5, %v58_v31 }
 0x103   :  { %v60_v33 = vsub.f32 1.5, %v59_v32 }
 0x104   :  { %v170_v34 = vpop.eup %169 }
 0x105   :  { %v61_v35 = vmul.f32 %v168_v28, %v60_v33  ;;  %v67_v36 = vmul.f32 %v170_v34, %v55_v29  ;;  %vm73_vm5 = vweird.f32 %v170_v34 }
 0x106   :  { %vm74_vm7 = vmor %vm72_vm6, %vm73_vm5 }
 0x107   :  { %v68_v37 = vmul.f32 %v170_v34, %v67_v36  ;;  %v65_v38 = vsel %vm64_vm4, %v168_v28, %v61_v35 }
 0x108   :  { %v76_v41 = vmul.f32 %v65_v38, %v42_v13 }
 0x109   :  { %v69_v39 = vmul.f32 0.5, %v68_v37 }
 0x10a   :  { %v81_v46 = vmul.f32 %v162_v42, %v76_v41 }
 0x10b   :  { %v70_v40 = vsub.f32 1.5, %v69_v39 }
 0x10c   :  { %v86_v49 = vadd.f32 %v163_v47, %v81_v46 }
 0x10d   :  { %v71_v43 = vmul.f32 %v170_v34, %v70_v40 }
 0x10f   :  { %v75_v44 = vsel %vm74_vm7, %v170_v34, %v71_v43 }
 0x110   :  { %v77_v45 = vmul.f32 %v75_v44, %v43_v18 }
 0x112   :  { %v82_v48 = vmul.f32 %v162_v42, %v77_v45 }
 0x114   :  { %v87_v50 = vadd.f32 %v163_v47, %v82_v48 }
 0x116   :  { %v88_v51 = vpack.c.bf16 %v87_v50, %v86_v49 }
 0x118   :  { %155 = vmatmul.msk.bf16.vlgmr.msra.gmra.mxu0 %vm26_vm0, %v88_v51 }
 0x195   :  { %v121_v53 = vpop.f32.mrf.mxu0 }
 0x196   :  { %v122_v54 = vadd.f32 %v164_v52, %v121_v53 }
 0x198   :  { %127 = vst.msk [vmem:[#allocation2] sm:$0xff] %vm126_vm8, %v122_v54 }
 0x19d   :  { %v123_v55 = vpop.f32.mrf.mxu0 }
 0x19e   :  { %v124_v56 = vadd.f32 %v164_v52, %v123_v55 }
 0x1a0   :  { %128 = vst.msk [vmem:[#allocation2 + $0x8] sm:$0xff] %vm126_vm8, %v124_v56 }
 0x1a1   :  { %141 = dma.vmem_to_hbm [thread:$0]  %s134_s30, 256, %s136_s2, [#allocation3], %s199_s8, %s199_s8, %s200_s9  }
 0x1a2   :  { %195 = dma.done.wait [#allocation3], 256  }
 0x1a3   :  { %196 = vsyncadd [#allocation3], 4294967040 }
 0x1a4   :  { %146 = vsyncpa [#allocation3], 1 }

</bundles_post_ra>
